<compile_context>
chip_gen: v7x
topology: tpu7x:2x2x1
jax: 0.10.0
libtpu: 0.0.40
codegen_flags: <defaults>
</compile_context>

<pallas_src>
import math
import functools

import jax
import jax.numpy as jnp
from jax.experimental import pallas as pl
from jax.experimental.pallas import tpu as pltpu


MATMUL_DTYPE = jnp.bfloat16     # MXU-native on v5e/v6e/v7x; accumulation stays f32
LN_EPS = 1e-5


def _pick_tile(n, pref, align):
    """Largest divisor of n that is a multiple of `align` and <= pref.

    Falls back to the whole axis only when no aligned divisor exists (the only
    other layout-legal choice), instead of collapsing whenever `pref` itself
    does not divide n.
    """
    if n <= pref:
        return n
    t = (pref // align) * align
    while t >= align:
        if n % t == 0:
            return t
        t -= align
    return n


# --------------------- Kernel A: LayerNorm1 + qkv matmul ---------------------
# grid = (M tiles, N tiles).  LN1(x) is computed once per M tile (j == 0) and
# cached in a bf16 VMEM scratch; the weight is streamed in (D, tn) tiles.

def _ln_qkv_kernel(x_ref, g_ref, b_ref, w_ref, wb_ref, o_ref, xn_ref):
    j = pl.program_id(1)

    @pl.when(j == 0)
    def _():
        x = x_ref[...]                                        # (tm, D) f32
        mu = jnp.mean(x, axis=-1, keepdims=True)
        var = jnp.mean((x - mu) ** 2, axis=-1, keepdims=True)
        xn = (x - mu) * jax.lax.rsqrt(var + LN_EPS) * g_ref[...] + b_ref[...]
        xn_ref[...] = xn.astype(xn_ref.dtype)                 # bf16 cache

    o_ref[...] = (
        jnp.dot(xn_ref[...], w_ref[...], preferred_element_type=jnp.float32)
        + wb_ref[...]
    ).astype(o_ref.dtype)


def ln_qkv(x2d, gamma, beta, w_eff, bias):
    M, D = x2d.shape
    N = w_eff.shape[1]
    tm = _pick_tile(M, 512, 8)
    tn = _pick_tile(N, 512, 128)
    return pl.pallas_call(
        _ln_qkv_kernel,
        grid=(M // tm, N // tn),
        in_specs=[
            pl.BlockSpec((tm, D), lambda i, j: (i, 0)),
            pl.BlockSpec((1, D), lambda i, j: (0, 0)),
            pl.BlockSpec((1, D), lambda i, j: (0, 0)),
            pl.BlockSpec((D, tn), lambda i, j: (0, j)),
            pl.BlockSpec((1, tn), lambda i, j: (0, j)),
        ],
        out_specs=pl.BlockSpec((tm, tn), lambda i, j: (i, j)),
        out_shape=jax.ShapeDtypeStruct((M, N), jnp.bfloat16),
        scratch_shapes=[pltpu.VMEM((tm, D), jnp.bfloat16)],   # LN1(x) cache
        compiler_params=pltpu.CompilerParams(
            dimension_semantics=("parallel", "arbitrary")),
    )(x2d, gamma.reshape(1, D), beta.reshape(1, D), w_eff, bias.reshape(1, N))


# --------- Kernel B: flash attention + o_proj + residual (B, q, H, kv) -------
# Output block (tq, D) is indexed by (b, qi) only -> VMEM-resident across the
# (h, kv) axes and used directly as the o_proj/residual accumulator.

def _attn_kernel(q_ref, kv_ref, ow_ref, ob_ref, x_ref, o_ref,
                 m_ref, l_ref, acc_ref, *, dk, scale):
    h = pl.program_id(2)
    ki = pl.program_id(3)
    nk = pl.num_programs(3)

    @pl.when((h == 0) & (ki == 0))
    def _():  # residual + o_proj bias, once per output block
        o_ref[...] = x_ref[...] + ob_ref[...]

    @pl.when(ki == 0)
    def _():  # fresh online-softmax state per (b, qi, h)
        m_ref[...] = jnp.full_like(m_ref, -jnp.inf)
        l_ref[...] = jnp.zeros_like(l_ref)
        acc_ref[...] = jnp.zeros_like(acc_ref)

    qkv_q = q_ref[0]                                          # (tq, 3*dk) bf16
    kv = kv_ref[0]                                            # (tk, 3*dk) bf16
    q = qkv_q[:, :dk] * scale                                 # scale folded into q
    k = kv[:, dk:2 * dk]
    v = kv[:, 2 * dk:]

    s = jnp.einsum("qd,kd->qk", q, k,
                   preferred_element_type=jnp.float32)        # (tq, tk) f32
    m_prev = m_ref[...]
    m_new = jnp.maximum(m_prev, jnp.max(s, axis=-1, keepdims=True))
    alpha = jnp.exp(m_prev - m_new)
    p = jnp.exp(s - m_new)
    l_ref[...] = alpha * l_ref[...] + jnp.sum(p, axis=-1, keepdims=True)
    acc_ref[...] = alpha * acc_ref[...] + jnp.dot(
        p.astype(MATMUL_DTYPE), v, preferred_element_type=jnp.float32)
    m_ref[...] = m_new

    @pl.when(ki == nk - 1)
    def _():  # per-head o_proj contribution, accumulated into the output block
        ao = acc_ref[...] * pl.reciprocal(l_ref[...], approx=True)
        o_ref[...] += jnp.dot(ao.astype(MATMUL_DTYPE), ow_ref[...],
                              preferred_element_type=jnp.float32)


def attn_o_residual(qkv, o_w, o_b, x2d, *, B, H, S, dk):
    M, D = x2d.shape
    tq = _pick_tile(S, 256, 8)
    tk = _pick_tile(S, 512, 8)
    nq = S // tq
    nk = S // tk
    scale = 1.0 / math.sqrt(dk)
    return pl.pallas_call(
        functools.partial(_attn_kernel, dk=dk, scale=scale),
        grid=(B, nq, H, nk),
        in_specs=[
            # q rows of head (b, h):     qkv has shape (B*H, S, 3*dk)
            pl.BlockSpec((1, tq, 3 * dk), lambda b, qi, h, ki: (b * H + h, qi, 0)),
            # kv tile of head (b, h)
            pl.BlockSpec((1, tk, 3 * dk), lambda b, qi, h, ki: (b * H + h, ki, 0)),
            # per-head slice of the o_proj weight, tiled by the BlockSpec
            pl.BlockSpec((dk, D), lambda b, qi, h, ki: (h, 0)),
            pl.BlockSpec((1, D), lambda b, qi, h, ki: (0, 0)),
            # residual rows
            pl.BlockSpec((tq, D), lambda b, qi, h, ki: (b * nq + qi, 0)),
        ],
        out_specs=pl.BlockSpec((tq, D), lambda b, qi, h, ki: (b * nq + qi, 0)),
        out_shape=jax.ShapeDtypeStruct((M, D), jnp.float32),
        scratch_shapes=[pltpu.VMEM((tq, 1), jnp.float32),     # running max
                        pltpu.VMEM((tq, 1), jnp.float32),     # running denom
                        pltpu.VMEM((tq, dk), jnp.float32)],   # unnormalized acc
        compiler_params=pltpu.CompilerParams(
            dimension_semantics=("parallel", "parallel", "arbitrary", "arbitrary")),
    )(qkv, qkv, o_w, o_b.reshape(1, D), x2d)


# ------- Kernel C: LayerNorm2 + ff1 + ReLU + ff2 + residual (ff tiled) -------
# Output block index is constant over the ff axis -> the f32 output block is
# VMEM-resident and used directly as the accumulator (residual + ff2 bias are
# folded into its j==0 init); LN2 cache is bf16.

def _ln_ff_res_kernel(x_ref, g_ref, b_ref, w1_ref, b1_ref, w2_ref, b2_ref,
                      o_ref, xn_ref):
    j = pl.program_id(1)

    @pl.when(j == 0)
    def _():
        x = x_ref[...]
        mu = jnp.mean(x, axis=-1, keepdims=True)
        var = jnp.mean((x - mu) ** 2, axis=-1, keepdims=True)
        xn = (x - mu) * jax.lax.rsqrt(var + LN_EPS) * g_ref[...] + b_ref[...]
        xn_ref[...] = xn.astype(xn_ref.dtype)                 # bf16 cache
        o_ref[...] = x + b2_ref[...]                          # residual + ff2 bias

    h = jnp.dot(xn_ref[...], w1_ref[...],
                preferred_element_type=jnp.float32) + b1_ref[...]
    h = jnp.maximum(h, 0.0)
    o_ref[...] += jnp.dot(h.astype(MATMUL_DTYPE), w2_ref[...],
                          preferred_element_type=jnp.float32)


def ln_ff_residual(x2d, gamma, beta, w1, b1, w2, b2):
    M, D = x2d.shape
    F = w1.shape[1]
    tm = _pick_tile(M, 512, 8)
    tf = _pick_tile(F, 512, 128)     # 512 ff tiles: ~85% HBM roofline, v7x-safe
    return pl.pallas_call(
        _ln_ff_res_kernel,
        grid=(M // tm, F // tf),
        in_specs=[
            pl.BlockSpec((tm, D), lambda i, j: (i, 0)),
            pl.BlockSpec((1, D), lambda i, j: (0, 0)),
            pl.BlockSpec((1, D), lambda i, j: (0, 0)),
            pl.BlockSpec((D, tf), lambda i, j: (0, j)),
            pl.BlockSpec((1, tf), lambda i, j: (0, j)),
            pl.BlockSpec((tf, D), lambda i, j: (j, 0)),
            pl.BlockSpec((1, D), lambda i, j: (0, 0)),
        ],
        out_specs=pl.BlockSpec((tm, D), lambda i, j: (i, 0)),
        out_shape=jax.ShapeDtypeStruct((M, D), jnp.float32),
        scratch_shapes=[pltpu.VMEM((tm, D), jnp.bfloat16)],   # LN2(x) cache
        compiler_params=pltpu.CompilerParams(
            dimension_semantics=("parallel", "arbitrary")),
    )(x2d, gamma.reshape(1, D), beta.reshape(1, D),
      w1, b1.reshape(1, F), w2, b2.reshape(1, D))


# --------------------------- Encoder layer / model ---------------------------

def encoder_layer(x, p, n_head, d_k):
    B, S, D = x.shape
    H, dk = n_head, d_k
    M = B * S
    x2 = x.reshape(M, D)

    # Fold the x.repeat(1,1,3) trick into the weight (exact algebra), then cast
    # weights to bf16 once per layer call.
    w_eff = (p["qkv_w"][:D] + p["qkv_w"][D:2 * D] + p["qkv_w"][2 * D:]
             ).astype(MATMUL_DTYPE)

    # --- MHA branch: LN1 + qkv, then flash attention + o_proj + residual -----
    qkv = ln_qkv(x2, p["ln1_g"], p["ln1_b"], w_eff, p["qkv_b"])   # (M, 3*H*dk) bf16
    # PyTorch: (B, S, 3*H*dk).reshape(B, H, S, 3*dk) — pure flat reinterpretation.
    qkv = qkv.reshape(B * H, S, 3 * dk)
    x2 = attn_o_residual(qkv, p["o_w"].astype(MATMUL_DTYPE), p["o_b"], x2,
                         B=B, H=H, S=S, dk=dk)

    # --- FF branch: LN2 + ff1/ReLU + ff2 + residual ---------------------------
    x2 = ln_ff_residual(x2, p["ln2_g"], p["ln2_b"],
                        p["ff1_w"].astype(MATMUL_DTYPE), p["ff1_b"],
                        p["ff2_w"].astype(MATMUL_DTYPE), p["ff2_b"])
    return x2.reshape(B, S, D)


def transformer_encoder(x, layer_params, n_head, d_k):
    for p in layer_params:
        x = encoder_layer(x, p, n_head, d_k)
    return x


# ------------------------------ parameter init -------------------------------

def _xavier_uniform(key, fan_in, fan_out):
    bound = math.sqrt(6.0 / (fan_in + fan_out))
    return jax.random.uniform(key, (fan_in, fan_out), jnp.float32, -bound, bound)


def init_params(key, n_layer, n_head, d_model, d_k, ff_dim):
    layers = []
    for _ in range(n_layer):
        key, k1, k2, k3, k4, k5, k6 = jax.random.split(key, 7)
        din = 3 * d_model                  # mha input_dim = 3*d_model
        dout = 3 * d_k * n_head            # = 3*d_model
        layers.append(dict(
            ln1_g=jnp.ones((d_model,), jnp.float32),
            ln1_b=jnp.zeros((d_model,), jnp.float32),
            qkv_w=_xavier_uniform(k1, din, dout),
            qkv_b=jnp.zeros((dout,), jnp.float32),
            o_w=_xavier_uniform(k2, d_k * n_head, d_k * n_head),
            o_b=jnp.zeros((d_k * n_head,), jnp.float32),
            ln2_g=jnp.ones((d_model,), jnp.float32),
            ln2_b=jnp.zeros((d_model,), jnp.float32),
            ff1_w=_xavier_uniform(k3, d_model, ff_dim),
            ff1_b=0.01 * jax.random.normal(k4, (ff_dim,), jnp.float32),
            ff2_w=_xavier_uniform(k5, ff_dim, d_model),
            ff2_b=0.01 * jax.random.normal(k6, (d_model,), jnp.float32),
        ))
    return layers


# ---------------------------- pure-JAX f32 reference -------------------------

def reference_forward(x, layer_params, n_head, d_k):
    def ln(x2, g, b):
        mu = jnp.mean(x2, -1, keepdims=True)
        var = jnp.mean((x2 - mu) ** 2, -1, keepdims=True)
        return (x2 - mu) / jnp.sqrt(var + LN_EPS) * g + b

    B, S, D = x.shape
    H, dk = n_head, d_k
    for p in layer_params:
        h = ln(x, p["ln1_g"], p["ln1_b"])
        h = jnp.tile(h, (1, 1, 3))
        qkv = h @ p["qkv_w"] + p["qkv_b"]
        qkv = qkv.reshape(B, H, S, 3 * dk)
        q, k, v = jnp.split(qkv, 3, axis=-1)
        s = jnp.einsum("bhqd,bhkd->bhqk", q, k) / math.sqrt(dk)
        att = jax.nn.softmax(s, axis=-1)
        ao = jnp.einsum("bhqk,bhkd->bhqd", att, v)
        ao = ao.transpose(0, 2, 1, 3).reshape(B, S, H * dk)
        ao = ao @ p["o_w"] + p["o_b"]
        x = x + ao
        h = ln(x, p["ln2_g"], p["ln2_b"])
        h = jnp.maximum(h @ p["ff1_w"] + p["ff1_b"], 0.0)
        h = h @ p["ff2_w"] + p["ff2_b"]
        x = x + h
    return x


# ------------------------------------ main -----------------------------------

if __name__ == "__main__":
    n_layer, n_head, d_k = 2, 4, 8
    d_model = n_head * d_k                # 32 ; d_model == d_k * n_head holds
    ff_dim = 2048                         # hard-coded in the PyTorch module
    B, S = 2, 8

    key = jax.random.PRNGKey(0)
    key, kx, kp = jax.random.split(key, 3)
    x = jax.random.normal(kx, (B, S, d_model), jnp.float32)
    params = init_params(kp, n_layer, n_head, d_model, d_k, ff_dim)

    fwd = jax.jit(lambda xx, pp: transformer_encoder(xx, pp, n_head, d_k))
    out = jax.block_until_ready(fwd(x, params))

    ref = reference_forward(x, params, n_head, d_k)
    assert out.shape == (B, S, d_model)
    # bf16 MXU operands (f32 accumulation) vs a pure-f32 reference: 5e-2 is the
    # appropriate tolerance at these magnitudes; kernel logic itself is exact.
    assert jnp.allclose(out, ref, rtol=5e-2, atol=5e-2), "mismatch vs JAX reference"

    print("KERNEL_OK")
</pallas_src>

<mosaic_0001>
module attributes {stable_mosaic.version = 11 : i64} {
  func.func @_ln_qkv_kernel(%arg0: i32, %arg1: i32, %arg2: memref<16x32xf32, #tpu.memory_space<vmem>>, %arg3: memref<1x32xf32, #tpu.memory_space<vmem>>, %arg4: memref<1x32xf32, #tpu.memory_space<vmem>>, %arg5: memref<32x96xbf16, #tpu.memory_space<vmem>>, %arg6: memref<1x96xf32, #tpu.memory_space<vmem>>, %arg7: memref<16x96xbf16, #tpu.memory_space<vmem>>, %arg8: memref<16x32xbf16, #tpu.memory_space<vmem>>) attributes {dimension_semantics = [#tpu.dimension_semantics<parallel>, #tpu.dimension_semantics<arbitrary>], iteration_bounds = array<i64: 1, 1>, scalar_prefetch = 0 : i64, scratch_operands = 1 : i64, tpu.core_type = #tpu.core_type<tc>, window_params = [{transform_indices = @transform_0, window_bounds = array<i64: 16, 32>}, {pipeline_mode = #tpu.pipeline_mode<synchronous>, transform_indices = @transform_1, window_bounds = array<i64: 1, 32>}, {pipeline_mode = #tpu.pipeline_mode<synchronous>, transform_indices = @transform_2, window_bounds = array<i64: 1, 32>}, {transform_indices = @transform_3, window_bounds = array<i64: 32, 96>}, {transform_indices = @transform_4, window_bounds = array<i64: 1, 96>}, {transform_indices = @transform_5, window_bounds = array<i64: 16, 96>}]} {
    %c0_i32 = arith.constant 0 : i32
    %0 = arith.cmpi eq, %arg1, %c0_i32 : i32
    %1 = arith.extui %0 : i1 to i32
    %c0_i32_0 = arith.constant 0 : i32
    %2 = arith.cmpi ne, %1, %c0_i32_0 : i32
    scf.if %2 {
      %c0_8 = arith.constant 0 : index
      %c0_9 = arith.constant 0 : index
      %11 = vector.load %arg2[%c0_8, %c0_9] : memref<16x32xf32, #tpu.memory_space<vmem>>, vector<16x32xf32>
      %cst_10 = arith.constant dense<0.000000e+00> : vector<16xf32>
      %12 = vector.multi_reduction <add>, %11, %cst_10 [1] : vector<16x32xf32> to vector<16xf32>
      %13 = vector.shape_cast %12 : vector<16xf32> to vector<16x1xf32>
      %cst_11 = arith.constant 3.200000e+01 : f32
      %14 = vector.broadcast %cst_11 : f32 to vector<16x1xf32>
      %15 = arith.divf %13, %14 : vector<16x1xf32>
      %16 = vector.broadcast %15 : vector<16x1xf32> to vector<16x32xf32>
      %17 = arith.subf %11, %16 : vector<16x32xf32>
      %18 = arith.mulf %17, %17 : vector<16x32xf32>
      %cst_12 = arith.constant dense<0.000000e+00> : vector<16xf32>
      %19 = vector.multi_reduction <add>, %18, %cst_12 [1] : vector<16x32xf32> to vector<16xf32>
      %20 = vector.shape_cast %19 : vector<16xf32> to vector<16x1xf32>
      %cst_13 = arith.constant 3.200000e+01 : f32
      %21 = vector.broadcast %cst_13 : f32 to vector<16x1xf32>
      %22 = arith.divf %20, %21 : vector<16x1xf32>
      %23 = vector.broadcast %15 : vector<16x1xf32> to vector<16x32xf32>
      %24 = arith.subf %11, %23 : vector<16x32xf32>
      %cst_14 = arith.constant 9.99999974E-6 : f32
      %25 = vector.broadcast %cst_14 : f32 to vector<16x1xf32>
      %26 = arith.addf %22, %25 : vector<16x1xf32>
      %27 = math.rsqrt %26 : vector<16x1xf32>
      %28 = vector.broadcast %27 : vector<16x1xf32> to vector<16x32xf32>
      %29 = arith.mulf %24, %28 : vector<16x32xf32>
      %c0_15 = arith.constant 0 : index
      %c0_16 = arith.constant 0 : index
      %30 = vector.load %arg3[%c0_15, %c0_16] : memref<1x32xf32, #tpu.memory_space<vmem>>, vector<1x32xf32>
      %31 = vector.broadcast %30 : vector<1x32xf32> to vector<16x32xf32>
      %32 = arith.mulf %29, %31 : vector<16x32xf32>
      %c0_17 = arith.constant 0 : index
      %c0_18 = arith.constant 0 : index
      %33 = vector.load %arg4[%c0_17, %c0_18] : memref<1x32xf32, #tpu.memory_space<vmem>>, vector<1x32xf32>
      %34 = vector.broadcast %33 : vector<1x32xf32> to vector<16x32xf32>
      %35 = arith.addf %32, %34 : vector<16x32xf32>
      %36 = arith.truncf %35 : vector<16x32xf32> to vector<16x32xbf16>
      %c0_19 = arith.constant 0 : index
      %c0_20 = arith.constant 0 : index
      %37 = vector.load %arg8[%c0_19, %c0_20] : memref<16x32xbf16, #tpu.memory_space<vmem>>, vector<16x32xbf16>
      tpu.vector_store %arg8[%c0_19, %c0_20], %36 {strides = array<i32>} : memref<16x32xbf16, #tpu.memory_space<vmem>>, vector<16x32xbf16>,
    } else {
    }
    %c0 = arith.constant 0 : index
    %c0_1 = arith.constant 0 : index
    %3 = vector.load %arg8[%c0, %c0_1] : memref<16x32xbf16, #tpu.memory_space<vmem>>, vector<16x32xbf16>
    %c0_2 = arith.constant 0 : index
    %c0_3 = arith.constant 0 : index
    %4 = vector.load %arg5[%c0_2, %c0_3] : memref<32x96xbf16, #tpu.memory_space<vmem>>, vector<32x96xbf16>
    %cst = arith.constant dense<0.000000e+00> : vector<16x96xf32>
    %5 = tpu.matmul %3, %4, %cst {dimension_numbers = #tpu.dot_dimension_numbers<[1], [0], [0], [1], [0, 0, 1, 1], [], []>} : vector<16x32xbf16>, vector<32x96xbf16>, vector<16x96xf32> -> vector<16x96xf32>
    %c0_4 = arith.constant 0 : index
    %c0_5 = arith.constant 0 : index
    %6 = vector.load %arg6[%c0_4, %c0_5] : memref<1x96xf32, #tpu.memory_space<vmem>>, vector<1x96xf32>
    %7 = vector.broadcast %6 : vector<1x96xf32> to vector<16x96xf32>
    %8 = arith.addf %5, %7 : vector<16x96xf32>
    %9 = arith.truncf %8 : vector<16x96xf32> to vector<16x96xbf16>
    %c0_6 = arith.constant 0 : index
    %c0_7 = arith.constant 0 : index
    %10 = vector.load %arg7[%c0_6, %c0_7] : memref<16x96xbf16, #tpu.memory_space<vmem>>, vector<16x96xbf16>
    tpu.vector_store %arg7[%c0_6, %c0_7], %9 {strides = array<i32>} : memref<16x96xbf16, #tpu.memory_space<vmem>>, vector<16x96xbf16>,
    return
  }
  func.func @transform_0(%arg0: i32, %arg1: i32) -> (i32, i32) {
    %c0_i32 = arith.constant 0 : i32
    %c0_i32_0 = arith.constant 0 : i32
    return %arg0, %c0_i32 : i32, i32
  }
  func.func @transform_1(%arg0: i32, %arg1: i32) -> (i32, i32) {
    %c0_i32 = arith.constant 0 : i32
    %c0_i32_0 = arith.constant 0 : i32
    %c0_i32_1 = arith.constant 0 : i32
    return %c0_i32, %c0_i32_0 : i32, i32
  }
  func.func @transform_2(%arg0: i32, %arg1: i32) -> (i32, i32) {
    %c0_i32 = arith.constant 0 : i32
    %c0_i32_0 = arith.constant 0 : i32
    %c0_i32_1 = arith.constant 0 : i32
    return %c0_i32, %c0_i32_0 : i32, i32
  }
  func.func @transform_3(%arg0: i32, %arg1: i32) -> (i32, i32) {
    %c0_i32 = arith.constant 0 : i32
    %c0_i32_0 = arith.constant 0 : i32
    return %c0_i32, %arg1 : i32, i32
  }
  func.func @transform_4(%arg0: i32, %arg1: i32) -> (i32, i32) {
    %c0_i32 = arith.constant 0 : i32
    %c0_i32_0 = arith.constant 0 : i32
    return %c0_i32, %arg1 : i32, i32
  }
  func.func @transform_5(%arg0: i32, %arg1: i32) -> (i32, i32) {
    %c0_i32 = arith.constant 0 : i32
    return %arg0, %arg1 : i32, i32
  }
}

module attributes {stable_mosaic.version = 11 : i64} {
  func.func @_ln_ff_res_kernel(%arg0: i32, %arg1: i32, %arg2: memref<16x32xf32, #tpu.memory_space<vmem>>, %arg3: memref<1x32xf32, #tpu.memory_space<vmem>>, %arg4: memref<1x32xf32, #tpu.memory_space<vmem>>, %arg5: memref<32x512xbf16, #tpu.memory_space<vmem>>, %arg6: memref<1x512xf32, #tpu.memory_space<vmem>>, %arg7: memref<512x32xbf16, #tpu.memory_space<vmem>>, %arg8: memref<1x32xf32, #tpu.memory_space<vmem>>, %arg9: memref<16x32xf32, #tpu.memory_space<vmem>>, %arg10: memref<16x32xbf16, #tpu.memory_space<vmem>>) attributes {dimension_semantics = [#tpu.dimension_semantics<parallel>, #tpu.dimension_semantics<arbitrary>], iteration_bounds = array<i64: 1, 4>, scalar_prefetch = 0 : i64, scratch_operands = 1 : i64, tpu.core_type = #tpu.core_type<tc>, window_params = [{transform_indices = @transform_0, window_bounds = array<i64: 16, 32>}, {pipeline_mode = #tpu.pipeline_mode<synchronous>, transform_indices = @transform_1, window_bounds = array<i64: 1, 32>}, {pipeline_mode = #tpu.pipeline_mode<synchronous>, transform_indices = @transform_2, window_bounds = array<i64: 1, 32>}, {transform_indices = @transform_3, window_bounds = array<i64: 32, 512>}, {transform_indices = @transform_4, window_bounds = array<i64: 1, 512>}, {transform_indices = @transform_5, window_bounds = array<i64: 512, 32>}, {pipeline_mode = #tpu.pipeline_mode<synchronous>, transform_indices = @transform_6, window_bounds = array<i64: 1, 32>}, {transform_indices = @transform_7, window_bounds = array<i64: 16, 32>}]} {
    %c0_i32 = arith.constant 0 : i32
    %0 = arith.cmpi eq, %arg1, %c0_i32 : i32
    %1 = arith.extui %0 : i1 to i32
    %c0_i32_0 = arith.constant 0 : i32
    %2 = arith.cmpi ne, %1, %c0_i32_0 : i32
    scf.if %2 {
      %c0_14 = arith.constant 0 : index
      %c0_15 = arith.constant 0 : index
      %17 = vector.load %arg2[%c0_14, %c0_15] : memref<16x32xf32, #tpu.memory_space<vmem>>, vector<16x32xf32>
      %cst_16 = arith.constant dense<0.000000e+00> : vector<16xf32>
      %18 = vector.multi_reduction <add>, %17, %cst_16 [1] : vector<16x32xf32> to vector<16xf32>
      %19 = vector.shape_cast %18 : vector<16xf32> to vector<16x1xf32>
      %cst_17 = arith.constant 3.200000e+01 : f32
      %20 = vector.broadcast %cst_17 : f32 to vector<16x1xf32>
      %21 = arith.divf %19, %20 : vector<16x1xf32>
      %22 = vector.broadcast %21 : vector<16x1xf32> to vector<16x32xf32>
      %23 = arith.subf %17, %22 : vector<16x32xf32>
      %24 = arith.mulf %23, %23 : vector<16x32xf32>
      %cst_18 = arith.constant dense<0.000000e+00> : vector<16xf32>
      %25 = vector.multi_reduction <add>, %24, %cst_18 [1] : vector<16x32xf32> to vector<16xf32>
      %26 = vector.shape_cast %25 : vector<16xf32> to vector<16x1xf32>
      %cst_19 = arith.constant 3.200000e+01 : f32
      %27 = vector.broadcast %cst_19 : f32 to vector<16x1xf32>
      %28 = arith.divf %26, %27 : vector<16x1xf32>
      %29 = vector.broadcast %21 : vector<16x1xf32> to vector<16x32xf32>
      %30 = arith.subf %17, %29 : vector<16x32xf32>
      %cst_20 = arith.constant 9.99999974E-6 : f32
      %31 = vector.broadcast %cst_20 : f32 to vector<16x1xf32>
      %32 = arith.addf %28, %31 : vector<16x1xf32>
      %33 = math.rsqrt %32 : vector<16x1xf32>
      %34 = vector.broadcast %33 : vector<16x1xf32> to vector<16x32xf32>
      %35 = arith.mulf %30, %34 : vector<16x32xf32>
      %c0_21 = arith.constant 0 : index
      %c0_22 = arith.constant 0 : index
      %36 = vector.load %arg3[%c0_21, %c0_22] : memref<1x32xf32, #tpu.memory_space<vmem>>, vector<1x32xf32>
      %37 = vector.broadcast %36 : vector<1x32xf32> to vector<16x32xf32>
      %38 = arith.mulf %35, %37 : vector<16x32xf32>
      %c0_23 = arith.constant 0 : index
      %c0_24 = arith.constant 0 : index
      %39 = vector.load %arg4[%c0_23, %c0_24] : memref<1x32xf32, #tpu.memory_space<vmem>>, vector<1x32xf32>
      %40 = vector.broadcast %39 : vector<1x32xf32> to vector<16x32xf32>
      %41 = arith.addf %38, %40 : vector<16x32xf32>
      %42 = arith.truncf %41 : vector<16x32xf32> to vector<16x32xbf16>
      %c0_25 = arith.constant 0 : index
      %c0_26 = arith.constant 0 : index
      %43 = vector.load %arg10[%c0_25, %c0_26] : memref<16x32xbf16, #tpu.memory_space<vmem>>, vector<16x32xbf16>
      tpu.vector_store %arg10[%c0_25, %c0_26], %42 {strides = array<i32>} : memref<16x32xbf16, #tpu.memory_space<vmem>>, vector<16x32xbf16>,
      %c0_27 = arith.constant 0 : index
      %c0_28 = arith.constant 0 : index
      %44 = vector.load %arg8[%c0_27, %c0_28] : memref<1x32xf32, #tpu.memory_space<vmem>>, vector<1x32xf32>
      %45 = vector.broadcast %44 : vector<1x32xf32> to vector<16x32xf32>
      %46 = arith.addf %17, %45 : vector<16x32xf32>
      %c0_29 = arith.constant 0 : index
      %c0_30 = arith.constant 0 : index
      %47 = vector.load %arg9[%c0_29, %c0_30] : memref<16x32xf32, #tpu.memory_space<vmem>>, vector<16x32xf32>
      tpu.vector_store %arg9[%c0_29, %c0_30], %46 {strides = array<i32>} : memref<16x32xf32, #tpu.memory_space<vmem>>, vector<16x32xf32>,
    } else {
    }
    %c0 = arith.constant 0 : index
    %c0_1 = arith.constant 0 : index
    %3 = vector.load %arg10[%c0, %c0_1] : memref<16x32xbf16, #tpu.memory_space<vmem>>, vector<16x32xbf16>
    %c0_2 = arith.constant 0 : index
    %c0_3 = arith.constant 0 : index
    %4 = vector.load %arg5[%c0_2, %c0_3] : memref<32x512xbf16, #tpu.memory_space<vmem>>, vector<32x512xbf16>
    %cst = arith.constant dense<0.000000e+00> : vector<16x512xf32>
    %5 = tpu.matmul %3, %4, %cst {dimension_numbers = #tpu.dot_dimension_numbers<[1], [0], [0], [1], [0, 0, 1, 1], [], []>} : vector<16x32xbf16>, vector<32x512xbf16>, vector<16x512xf32> -> vector<16x512xf32>
    %c0_4 = arith.constant 0 : index
    %c0_5 = arith.constant 0 : index
    %6 = vector.load %arg6[%c0_4, %c0_5] : memref<1x512xf32, #tpu.memory_space<vmem>>, vector<1x512xf32>
    %7 = vector.broadcast %6 : vector<1x512xf32> to vector<16x512xf32>
    %8 = arith.addf %5, %7 : vector<16x512xf32>
    %cst_6 = arith.constant 0.000000e+00 : f32
    %9 = vector.broadcast %cst_6 : f32 to vector<16x512xf32>
    %10 = arith.maximumf %8, %9 : vector<16x512xf32>
    %c0_7 = arith.constant 0 : index
    %c0_8 = arith.constant 0 : index
    %11 = vector.load %arg9[%c0_7, %c0_8] : memref<16x32xf32, #tpu.memory_space<vmem>>, vector<16x32xf32>
    %12 = arith.truncf %10 : vector<16x512xf32> to vector<16x512xbf16>
    %c0_9 = arith.constant 0 : index
    %c0_10 = arith.constant 0 : index
    %13 = vector.load %arg7[%c0_9, %c0_10] : memref<512x32xbf16, #tpu.memory_space<vmem>>, vector<512x32xbf16>
    %cst_11 = arith.constant dense<0.000000e+00> : vector<16x32xf32>
    %14 = tpu.matmul %12, %13, %cst_11 {dimension_numbers = #tpu.dot_dimension_numbers<[1], [0], [0], [1], [0, 0, 1, 1], [], []>} : vector<16x512xbf16>, vector<512x32xbf16>, vector<16x32xf32> -> vector<16x32xf32>
    %15 = arith.addf %11, %14 : vector<16x32xf32>
    %c0_12 = arith.constant 0 : index
    %c0_13 = arith.constant 0 : index
    %16 = vector.load %arg9[%c0_12, %c0_13] : memref<16x32xf32, #tpu.memory_space<vmem>>, vector<16x32xf32>
    tpu.vector_store %arg9[%c0_12, %c0_13], %15 {strides = array<i32>} : memref<16x32xf32, #tpu.memory_space<vmem>>, vector<16x32xf32>,
    return
  }
  func.func @transform_0(%arg0: i32, %arg1: i32) -> (i32, i32) {
    %c0_i32 = arith.constant 0 : i32
    %c0_i32_0 = arith.constant 0 : i32
    return %arg0, %c0_i32 : i32, i32
  }
  func.func @transform_1(%arg0: i32, %arg1: i32) -> (i32, i32) {
    %c0_i32 = arith.constant 0 : i32
    %c0_i32_0 = arith.constant 0 : i32
    %c0_i32_1 = arith.constant 0 : i32
    return %c0_i32, %c0_i32_0 : i32, i32
  }
  func.func @transform_2(%arg0: i32, %arg1: i32) -> (i32, i32) {
    %c0_i32 = arith.constant 0 : i32
    %c0_i32_0 = arith.constant 0 : i32
    %c0_i32_1 = arith.constant 0 : i32
    return %c0_i32, %c0_i32_0 : i32, i32
  }
  func.func @transform_3(%arg0: i32, %arg1: i32) -> (i32, i32) {
    %c0_i32 = arith.constant 0 : i32
    %c0_i32_0 = arith.constant 0 : i32
    return %c0_i32, %arg1 : i32, i32
  }
  func.func @transform_4(%arg0: i32, %arg1: i32) -> (i32, i32) {
    %c0_i32 = arith.constant 0 : i32
    %c0_i32_0 = arith.constant 0 : i32
    return %c0_i32, %arg1 : i32, i32
  }
  func.func @transform_5(%arg0: i32, %arg1: i32) -> (i32, i32) {
    %c0_i32 = arith.constant 0 : i32
    %c0_i32_0 = arith.constant 0 : i32
    return %arg1, %c0_i32 : i32, i32
  }
  func.func @transform_6(%arg0: i32, %arg1: i32) -> (i32, i32) {
    %c0_i32 = arith.constant 0 : i32
    %c0_i32_0 = arith.constant 0 : i32
    %c0_i32_1 = arith.constant 0 : i32
    return %c0_i32, %c0_i32_0 : i32, i32
  }
  func.func @transform_7(%arg0: i32, %arg1: i32) -> (i32, i32) {
    %c0_i32 = arith.constant 0 : i32
    %c0_i32_0 = arith.constant 0 : i32
    return %arg0, %c0_i32 : i32, i32
  }
}

module attributes {stable_mosaic.version = 11 : i64} {
  func.func @_attn_kernel(%arg0: i32, %arg1: i32, %arg2: i32, %arg3: i32, %arg4: memref<1x8x24xbf16, #tpu.memory_space<vmem>>, %arg5: memref<1x8x24xbf16, #tpu.memory_space<vmem>>, %arg6: memref<8x32xbf16, #tpu.memory_space<vmem>>, %arg7: memref<1x32xf32, #tpu.memory_space<vmem>>, %arg8: memref<8x32xf32, #tpu.memory_space<vmem>>, %arg9: memref<8x32xf32, #tpu.memory_space<vmem>>, %arg10: memref<8x1xf32, #tpu.memory_space<vmem>>, %arg11: memref<8x1xf32, #tpu.memory_space<vmem>>, %arg12: memref<8x8xf32, #tpu.memory_space<vmem>>) attributes {dimension_semantics = [#tpu.dimension_semantics<parallel>, #tpu.dimension_semantics<parallel>, #tpu.dimension_semantics<arbitrary>, #tpu.dimension_semantics<arbitrary>], iteration_bounds = array<i64: 2, 1, 4, 1>, scalar_prefetch = 0 : i64, scratch_operands = 3 : i64, tpu.core_type = #tpu.core_type<tc>, window_params = [{transform_indices = @transform_0, window_bounds = array<i64: 1, 8, 24>}, {transform_indices = @transform_1, window_bounds = array<i64: 1, 8, 24>}, {transform_indices = @transform_2, window_bounds = array<i64: 8, 32>}, {pipeline_mode = #tpu.pipeline_mode<synchronous>, transform_indices = @transform_3, window_bounds = array<i64: 1, 32>}, {transform_indices = @transform_4, window_bounds = array<i64: 8, 32>}, {transform_indices = @transform_5, window_bounds = array<i64: 8, 32>}]} {
    %c0_i32 = arith.constant 0 : i32
    %0 = arith.cmpi eq, %arg2, %c0_i32 : i32
    %c0_i32_0 = arith.constant 0 : i32
    %1 = arith.cmpi eq, %arg3, %c0_i32_0 : i32
    %2 = arith.andi %0, %1 : i1
    %3 = arith.extui %2 : i1 to i32
    %c0_i32_1 = arith.constant 0 : i32
    %4 = arith.cmpi ne, %3, %c0_i32_1 : i32
    scf.if %4 {
      %c0_27 = arith.constant 0 : index
      %c0_28 = arith.constant 0 : index
      %44 = vector.load %arg8[%c0_27, %c0_28] : memref<8x32xf32, #tpu.memory_space<vmem>>, vector<8x32xf32>
      %c0_29 = arith.constant 0 : index
      %c0_30 = arith.constant 0 : index
      %45 = vector.load %arg7[%c0_29, %c0_30] : memref<1x32xf32, #tpu.memory_space<vmem>>, vector<1x32xf32>
      %46 = vector.broadcast %45 : vector<1x32xf32> to vector<8x32xf32>
      %47 = arith.addf %44, %46 : vector<8x32xf32>
      %c0_31 = arith.constant 0 : index
      %c0_32 = arith.constant 0 : index
      %48 = vector.load %arg9[%c0_31, %c0_32] : memref<8x32xf32, #tpu.memory_space<vmem>>, vector<8x32xf32>
      tpu.vector_store %arg9[%c0_31, %c0_32], %47 {strides = array<i32>} : memref<8x32xf32, #tpu.memory_space<vmem>>, vector<8x32xf32>,
    } else {
    }
    %c0_i32_2 = arith.constant 0 : i32
    %5 = arith.cmpi eq, %arg3, %c0_i32_2 : i32
    %6 = arith.extui %5 : i1 to i32
    %c0_i32_3 = arith.constant 0 : i32
    %7 = arith.cmpi ne, %6, %c0_i32_3 : i32
    scf.if %7 {
      %cst_27 = arith.constant 0xFF800000 : f32
      %44 = vector.broadcast %cst_27 : f32 to vector<8x1xf32>
      %c0_28 = arith.constant 0 : index
      %c0_29 = arith.constant 0 : index
      %45 = vector.load %arg10[%c0_28, %c0_29] : memref<8x1xf32, #tpu.memory_space<vmem>>, vector<8x1xf32>
      tpu.vector_store %arg10[%c0_28, %c0_29], %44 {strides = array<i32>} : memref<8x1xf32, #tpu.memory_space<vmem>>, vector<8x1xf32>,
      %cst_30 = arith.constant 0.000000e+00 : f32
      %46 = vector.broadcast %cst_30 : f32 to vector<8x1xf32>
      %c0_31 = arith.constant 0 : index
      %c0_32 = arith.constant 0 : index
      %47 = vector.load %arg11[%c0_31, %c0_32] : memref<8x1xf32, #tpu.memory_space<vmem>>, vector<8x1xf32>
      tpu.vector_store %arg11[%c0_31, %c0_32], %46 {strides = array<i32>} : memref<8x1xf32, #tpu.memory_space<vmem>>, vector<8x1xf32>,
      %cst_33 = arith.constant 0.000000e+00 : f32
      %48 = vector.broadcast %cst_33 : f32 to vector<8x8xf32>
      %c0_34 = arith.constant 0 : index
      %c0_35 = arith.constant 0 : index
      %49 = vector.load %arg12[%c0_34, %c0_35] : memref<8x8xf32, #tpu.memory_space<vmem>>, vector<8x8xf32>
      tpu.vector_store %arg12[%c0_34, %c0_35], %48 {strides = array<i32>} : memref<8x8xf32, #tpu.memory_space<vmem>>, vector<8x8xf32>,
    } else {
    }
    %c0 = arith.constant 0 : index
    %c0_4 = arith.constant 0 : index
    %c0_5 = arith.constant 0 : index
    %8 = vector.load %arg4[%c0, %c0_4, %c0_5] : memref<1x8x24xbf16, #tpu.memory_space<vmem>>, vector<1x8x24xbf16>
    %9 = vector.shape_cast %8 : vector<1x8x24xbf16> to vector<8x24xbf16>
    %c0_6 = arith.constant 0 : index
    %c0_7 = arith.constant 0 : index
    %c0_8 = arith.constant 0 : index
    %10 = vector.load %arg5[%c0_6, %c0_7, %c0_8] : memref<1x8x24xbf16, #tpu.memory_space<vmem>>, vector<1x8x24xbf16>
    %11 = vector.shape_cast %10 : vector<1x8x24xbf16> to vector<8x24xbf16>
    %12 = vector.extract_strided_slice %9 {offsets = [0, 0], sizes = [8, 8], strides = [1, 1]} : vector<8x24xbf16> to vector<8x8xbf16>
    %cst = arith.constant 3.535160e-01 : bf16
    %13 = vector.broadcast %cst : bf16 to vector<8x8xbf16>
    %14 = arith.mulf %12, %13 : vector<8x8xbf16>
    %15 = vector.extract_strided_slice %11 {offsets = [0, 8], sizes = [8, 8], strides = [1, 1]} : vector<8x24xbf16> to vector<8x8xbf16>
    %16 = vector.extract_strided_slice %11 {offsets = [0, 16], sizes = [8, 8], strides = [1, 1]} : vector<8x24xbf16> to vector<8x8xbf16>
    "tpu.trace_start"() <{level = 10 : i32, message = "qd,kd->qk"}> : () -> ()
    %cst_9 = arith.constant dense<0.000000e+00> : vector<8x8xf32>
    %17 = tpu.matmul %14, %15, %cst_9 {dimension_numbers = #tpu.dot_dimension_numbers<[1], [1], [0], [0], [0, 0, 1, 0], [], []>} : vector<8x8xbf16>, vector<8x8xbf16>, vector<8x8xf32> -> vector<8x8xf32>
    "tpu.trace_stop"() : () -> ()
    %c0_10 = arith.constant 0 : index
    %c0_11 = arith.constant 0 : index
    %18 = vector.load %arg10[%c0_10, %c0_11] : memref<8x1xf32, #tpu.memory_space<vmem>>, vector<8x1xf32>
    %cst_12 = arith.constant dense<0xFF800000> : vector<8xf32>
    %19 = vector.multi_reduction <maximumf>, %17, %cst_12 [1] : vector<8x8xf32> to vector<8xf32>
    %20 = vector.shape_cast %19 : vector<8xf32> to vector<8x1xf32>
    %21 = arith.maximumf %18, %20 : vector<8x1xf32>
    %22 = arith.subf %18, %21 : vector<8x1xf32>
    %23 = math.exp %22 : vector<8x1xf32>
    %24 = vector.broadcast %21 : vector<8x1xf32> to vector<8x8xf32>
    %25 = arith.subf %17, %24 : vector<8x8xf32>
    %26 = math.exp %25 : vector<8x8xf32>
    %c0_13 = arith.constant 0 : index
    %c0_14 = arith.constant 0 : index
    %27 = vector.load %arg11[%c0_13, %c0_14] : memref<8x1xf32, #tpu.memory_space<vmem>>, vector<8x1xf32>
    %28 = arith.mulf %23, %27 : vector<8x1xf32>
    %cst_15 = arith.constant dense<0.000000e+00> : vector<8xf32>
    %29 = vector.multi_reduction <add>, %26, %cst_15 [1] : vector<8x8xf32> to vector<8xf32>
    %30 = vector.shape_cast %29 : vector<8xf32> to vector<8x1xf32>
    %31 = arith.addf %28, %30 : vector<8x1xf32>
    %c0_16 = arith.constant 0 : index
    %c0_17 = arith.constant 0 : index
    %32 = vector.load %arg11[%c0_16, %c0_17] : memref<8x1xf32, #tpu.memory_space<vmem>>, vector<8x1xf32>
    tpu.vector_store %arg11[%c0_16, %c0_17], %31 {strides = array<i32>} : memref<8x1xf32, #tpu.memory_space<vmem>>, vector<8x1xf32>,
    %c0_18 = arith.constant 0 : index
    %c0_19 = arith.constant 0 : index
    %33 = vector.load %arg12[%c0_18, %c0_19] : memref<8x8xf32, #tpu.memory_space<vmem>>, vector<8x8xf32>
    %34 = vector.broadcast %23 : vector<8x1xf32> to vector<8x8xf32>
    %35 = arith.mulf %34, %33 : vector<8x8xf32>
    %36 = arith.truncf %26 : vector<8x8xf32> to vector<8x8xbf16>
    %cst_20 = arith.constant dense<0.000000e+00> : vector<8x8xf32>
    %37 = tpu.matmul %36, %16, %cst_20 {dimension_numbers = #tpu.dot_dimension_numbers<[1], [0], [0], [1], [0, 0, 1, 1], [], []>} : vector<8x8xbf16>, vector<8x8xbf16>, vector<8x8xf32> -> vector<8x8xf32>
    %38 = arith.addf %35, %37 : vector<8x8xf32>
    %c0_21 = arith.constant 0 : index
    %c0_22 = arith.constant 0 : index
    %39 = vector.load %arg12[%c0_21, %c0_22] : memref<8x8xf32, #tpu.memory_space<vmem>>, vector<8x8xf32>
    tpu.vector_store %arg12[%c0_21, %c0_22], %38 {strides = array<i32>} : memref<8x8xf32, #tpu.memory_space<vmem>>, vector<8x8xf32>,
    %c0_23 = arith.constant 0 : index
    %c0_24 = arith.constant 0 : index
    %40 = vector.load %arg10[%c0_23, %c0_24] : memref<8x1xf32, #tpu.memory_space<vmem>>, vector<8x1xf32>
    tpu.vector_store %arg10[%c0_23, %c0_24], %21 {strides = array<i32>} : memref<8x1xf32, #tpu.memory_space<vmem>>, vector<8x1xf32>,
    %c0_i32_25 = arith.constant 0 : i32
    %41 = arith.cmpi eq, %arg3, %c0_i32_25 : i32
    %42 = arith.extui %41 : i1 to i32
    %c0_i32_26 = arith.constant 0 : i32
    %43 = arith.cmpi ne, %42, %c0_i32_26 : i32
    scf.if %43 {
      %c0_27 = arith.constant 0 : index
      %c0_28 = arith.constant 0 : index
      %44 = vector.load %arg12[%c0_27, %c0_28] : memref<8x8xf32, #tpu.memory_space<vmem>>, vector<8x8xf32>
      %c0_29 = arith.constant 0 : index
      %c0_30 = arith.constant 0 : index
      %45 = vector.load %arg11[%c0_29, %c0_30] : memref<8x1xf32, #tpu.memory_space<vmem>>, vector<8x1xf32>
      %46 = tpu.reciprocal %45 {approx = true} : vector<8x1xf32> -> vector<8x1xf32>
      %47 = vector.broadcast %46 : vector<8x1xf32> to vector<8x8xf32>
      %48 = arith.mulf %44, %47 : vector<8x8xf32>
      %c0_31 = arith.constant 0 : index
      %c0_32 = arith.constant 0 : index
      %49 = vector.load %arg9[%c0_31, %c0_32] : memref<8x32xf32, #tpu.memory_space<vmem>>, vector<8x32xf32>
      %50 = arith.truncf %48 : vector<8x8xf32> to vector<8x8xbf16>
      %c0_33 = arith.constant 0 : index
      %c0_34 = arith.constant 0 : index
      %51 = vector.load %arg6[%c0_33, %c0_34] : memref<8x32xbf16, #tpu.memory_space<vmem>>, vector<8x32xbf16>
      %cst_35 = arith.constant dense<0.000000e+00> : vector<8x32xf32>
      %52 = tpu.matmul %50, %51, %cst_35 {dimension_numbers = #tpu.dot_dimension_numbers<[1], [0], [0], [1], [0, 0, 1, 1], [], []>} : vector<8x8xbf16>, vector<8x32xbf16>, vector<8x32xf32> -> vector<8x32xf32>
      %53 = arith.addf %49, %52 : vector<8x32xf32>
      %c0_36 = arith.constant 0 : index
      %c0_37 = arith.constant 0 : index
      %54 = vector.load %arg9[%c0_36, %c0_37] : memref<8x32xf32, #tpu.memory_space<vmem>>, vector<8x32xf32>
      tpu.vector_store %arg9[%c0_36, %c0_37], %53 {strides = array<i32>} : memref<8x32xf32, #tpu.memory_space<vmem>>, vector<8x32xf32>,
    } else {
    }
    return
  }
  func.func @transform_0(%arg0: i32, %arg1: i32, %arg2: i32, %arg3: i32) -> (i32, i32, i32) {
    %c4_i32 = arith.constant 4 : i32
    %0 = arith.muli %arg0, %c4_i32 : i32
    %1 = arith.addi %0, %arg2 : i32
    %c0_i32 = arith.constant 0 : i32
    %c0_i32_0 = arith.constant 0 : i32
    return %1, %arg1, %c0_i32 : i32, i32, i32
  }
  func.func @transform_1(%arg0: i32, %arg1: i32, %arg2: i32, %arg3: i32) -> (i32, i32, i32) {
    %c4_i32 = arith.constant 4 : i32
    %0 = arith.muli %arg0, %c4_i32 : i32
    %1 = arith.addi %0, %arg2 : i32
    %c0_i32 = arith.constant 0 : i32
    %c0_i32_0 = arith.constant 0 : i32
    return %1, %arg3, %c0_i32 : i32, i32, i32
  }
  func.func @transform_2(%arg0: i32, %arg1: i32, %arg2: i32, %arg3: i32) -> (i32, i32) {
    %c0_i32 = arith.constant 0 : i32
    %c0_i32_0 = arith.constant 0 : i32
    return %arg2, %c0_i32 : i32, i32
  }
  func.func @transform_3(%arg0: i32, %arg1: i32, %arg2: i32, %arg3: i32) -> (i32, i32) {
    %c0_i32 = arith.constant 0 : i32
    %c0_i32_0 = arith.constant 0 : i32
    %c0_i32_1 = arith.constant 0 : i32
    return %c0_i32, %c0_i32_0 : i32, i32
  }
  func.func @transform_4(%arg0: i32, %arg1: i32, %arg2: i32, %arg3: i32) -> (i32, i32) {
    %c1_i32 = arith.constant 1 : i32
    %0 = arith.muli %arg0, %c1_i32 : i32
    %1 = arith.addi %0, %arg1 : i32
    %c0_i32 = arith.constant 0 : i32
    %c0_i32_0 = arith.constant 0 : i32
    return %1, %c0_i32 : i32, i32
  }
  func.func @transform_5(%arg0: i32, %arg1: i32, %arg2: i32, %arg3: i32) -> (i32, i32) {
    %c1_i32 = arith.constant 1 : i32
    %0 = arith.muli %arg0, %c1_i32 : i32
    %1 = arith.addi %0, %arg1 : i32
    %c0_i32 = arith.constant 0 : i32
    %c0_i32_0 = arith.constant 0 : i32
    return %1, %c0_i32 : i32, i32
  }
}

module attributes {stable_mosaic.version = 11 : i64} {
  func.func @_ln_ff_res_kernel(%arg0: i32, %arg1: i32, %arg2: memref<16x32xf32, #tpu.memory_space<vmem>>, %arg3: memref<1x32xf32, #tpu.memory_space<vmem>>, %arg4: memref<1x32xf32, #tpu.memory_space<vmem>>, %arg5: memref<32x512xbf16, #tpu.memory_space<vmem>>, %arg6: memref<1x512xf32, #tpu.memory_space<vmem>>, %arg7: memref<512x32xbf16, #tpu.memory_space<vmem>>, %arg8: memref<1x32xf32, #tpu.memory_space<vmem>>, %arg9: memref<16x32xf32, #tpu.memory_space<vmem>>, %arg10: memref<16x32xbf16, #tpu.memory_space<vmem>>) attributes {dimension_semantics = [#tpu.dimension_semantics<parallel>, #tpu.dimension_semantics<arbitrary>], iteration_bounds = array<i64: 1, 4>, scalar_prefetch = 0 : i64, scratch_operands = 1 : i64, tpu.core_type = #tpu.core_type<tc>, window_params = [{transform_indices = @transform_0, window_bounds = array<i64: 16, 32>}, {pipeline_mode = #tpu.pipeline_mode<synchronous>, transform_indices = @transform_1, window_bounds = array<i64: 1, 32>}, {pipeline_mode = #tpu.pipeline_mode<synchronous>, transform_indices = @transform_2, window_bounds = array<i64: 1, 32>}, {transform_indices = @transform_3, window_bounds = array<i64: 32, 512>}, {transform_indices = @transform_4, window_bounds = array<i64: 1, 512>}, {transform_indices = @transform_5, window_bounds = array<i64: 512, 32>}, {pipeline_mode = #tpu.pipeline_mode<synchronous>, transform_indices = @transform_6, window_bounds = array<i64: 1, 32>}, {transform_indices = @transform_7, window_bounds = array<i64: 16, 32>}]} {
    %c0_i32 = arith.constant 0 : i32
    %0 = arith.cmpi eq, %arg1, %c0_i32 : i32
    %1 = arith.extui %0 : i1 to i32
    %c0_i32_0 = arith.constant 0 : i32
    %2 = arith.cmpi ne, %1, %c0_i32_0 : i32
    scf.if %2 {
      %c0_14 = arith.constant 0 : index
      %c0_15 = arith.constant 0 : index
      %17 = vector.load %arg2[%c0_14, %c0_15] : memref<16x32xf32, #tpu.memory_space<vmem>>, vector<16x32xf32>
      %cst_16 = arith.constant dense<0.000000e+00> : vector<16xf32>
      %18 = vector.multi_reduction <add>, %17, %cst_16 [1] : vector<16x32xf32> to vector<16xf32>
      %19 = vector.shape_cast %18 : vector<16xf32> to vector<16x1xf32>
      %cst_17 = arith.constant 3.200000e+01 : f32
      %20 = vector.broadcast %cst_17 : f32 to vector<16x1xf32>
      %21 = arith.divf %19, %20 : vector<16x1xf32>
      %22 = vector.broadcast %21 : vector<16x1xf32> to vector<16x32xf32>
      %23 = arith.subf %17, %22 : vector<16x32xf32>
      %24 = arith.mulf %23, %23 : vector<16x32xf32>
      %cst_18 = arith.constant dense<0.000000e+00> : vector<16xf32>
      %25 = vector.multi_reduction <add>, %24, %cst_18 [1] : vector<16x32xf32> to vector<16xf32>
      %26 = vector.shape_cast %25 : vector<16xf32> to vector<16x1xf32>
      %cst_19 = arith.constant 3.200000e+01 : f32
      %27 = vector.broadcast %cst_19 : f32 to vector<16x1xf32>
      %28 = arith.divf %26, %27 : vector<16x1xf32>
      %29 = vector.broadcast %21 : vector<16x1xf32> to vector<16x32xf32>
      %30 = arith.subf %17, %29 : vector<16x32xf32>
      %cst_20 = arith.constant 9.99999974E-6 : f32
      %31 = vector.broadcast %cst_20 : f32 to vector<16x1xf32>
      %32 = arith.addf %28, %31 : vector<16x1xf32>
      %33 = math.rsqrt %32 : vector<16x1xf32>
      %34 = vector.broadcast %33 : vector<16x1xf32> to vector<16x32xf32>
      %35 = arith.mulf %30, %34 : vector<16x32xf32>
      %c0_21 = arith.constant 0 : index
      %c0_22 = arith.constant 0 : index
      %36 = vector.load %arg3[%c0_21, %c0_22] : memref<1x32xf32, #tpu.memory_space<vmem>>, vector<1x32xf32>
      %37 = vector.broadcast %36 : vector<1x32xf32> to vector<16x32xf32>
      %38 = arith.mulf %35, %37 : vector<16x32xf32>
      %c0_23 = arith.constant 0 : index
      %c0_24 = arith.constant 0 : index
      %39 = vector.load %arg4[%c0_23, %c0_24] : memref<1x32xf32, #tpu.memory_space<vmem>>, vector<1x32xf32>
      %40 = vector.broadcast %39 : vector<1x32xf32> to vector<16x32xf32>
      %41 = arith.addf %38, %40 : vector<16x32xf32>
      %42 = arith.truncf %41 : vector<16x32xf32> to vector<16x32xbf16>
      %c0_25 = arith.constant 0 : index
      %c0_26 = arith.constant 0 : index
      %43 = vector.load %arg10[%c0_25, %c0_26] : memref<16x32xbf16, #tpu.memory_space<vmem>>, vector<16x32xbf16>
      tpu.vector_store %arg10[%c0_25, %c0_26], %42 {strides = array<i32>} : memref<16x32xbf16, #tpu.memory_space<vmem>>, vector<16x32xbf16>,
      %c0_27 = arith.constant 0 : index
      %c0_28 = arith.constant 0 : index
      %44 = vector.load %arg8[%c0_27, %c0_28] : memref<1x32xf32, #tpu.memory_space<vmem>>, vector<1x32xf32>
      %45 = vector.broadcast %44 : vector<1x32xf32> to vector<16x32xf32>
      %46 = arith.addf %17, %45 : vector<16x32xf32>
      %c0_29 = arith.constant 0 : index
      %c0_30 = arith.constant 0 : index
      %47 = vector.load %arg9[%c0_29, %c0_30] : memref<16x32xf32, #tpu.memory_space<vmem>>, vector<16x32xf32>
      tpu.vector_store %arg9[%c0_29, %c0_30], %46 {strides = array<i32>} : memref<16x32xf32, #tpu.memory_space<vmem>>, vector<16x32xf32>,
    } else {
    }
    %c0 = arith.constant 0 : index
    %c0_1 = arith.constant 0 : index
    %3 = vector.load %arg10[%c0, %c0_1] : memref<16x32xbf16, #tpu.memory_space<vmem>>, vector<16x32xbf16>
    %c0_2 = arith.constant 0 : index
    %c0_3 = arith.constant 0 : index
    %4 = vector.load %arg5[%c0_2, %c0_3] : memref<32x512xbf16, #tpu.memory_space<vmem>>, vector<32x512xbf16>
    %cst = arith.constant dense<0.000000e+00> : vector<16x512xf32>
    %5 = tpu.matmul %3, %4, %cst {dimension_numbers = #tpu.dot_dimension_numbers<[1], [0], [0], [1], [0, 0, 1, 1], [], []>} : vector<16x32xbf16>, vector<32x512xbf16>, vector<16x512xf32> -> vector<16x512xf32>
    %c0_4 = arith.constant 0 : index
    %c0_5 = arith.constant 0 : index
    %6 = vector.load %arg6[%c0_4, %c0_5] : memref<1x512xf32, #tpu.memory_space<vmem>>, vector<1x512xf32>
    %7 = vector.broadcast %6 : vector<1x512xf32> to vector<16x512xf32>
    %8 = arith.addf %5, %7 : vector<16x512xf32>
    %cst_6 = arith.constant 0.000000e+00 : f32
    %9 = vector.broadcast %cst_6 : f32 to vector<16x512xf32>
    %10 = arith.maximumf %8, %9 : vector<16x512xf32>
    %c0_7 = arith.constant 0 : index
    %c0_8 = arith.constant 0 : index
    %11 = vector.load %arg9[%c0_7, %c0_8] : memref<16x32xf32, #tpu.memory_space<vmem>>, vector<16x32xf32>
    %12 = arith.truncf %10 : vector<16x512xf32> to vector<16x512xbf16>
    %c0_9 = arith.constant 0 : index
    %c0_10 = arith.constant 0 : index
    %13 = vector.load %arg7[%c0_9, %c0_10] : memref<512x32xbf16, #tpu.memory_space<vmem>>, vector<512x32xbf16>
    %cst_11 = arith.constant dense<0.000000e+00> : vector<16x32xf32>
    %14 = tpu.matmul %12, %13, %cst_11 {dimension_numbers = #tpu.dot_dimension_numbers<[1], [0], [0], [1], [0, 0, 1, 1], [], []>} : vector<16x512xbf16>, vector<512x32xbf16>, vector<16x32xf32> -> vector<16x32xf32>
    %15 = arith.addf %11, %14 : vector<16x32xf32>
    %c0_12 = arith.constant 0 : index
    %c0_13 = arith.constant 0 : index
    %16 = vector.load %arg9[%c0_12, %c0_13] : memref<16x32xf32, #tpu.memory_space<vmem>>, vector<16x32xf32>
    tpu.vector_store %arg9[%c0_12, %c0_13], %15 {strides = array<i32>} : memref<16x32xf32, #tpu.memory_space<vmem>>, vector<16x32xf32>,
    return
  }
  func.func @transform_0(%arg0: i32, %arg1: i32) -> (i32, i32) {
    %c0_i32 = arith.constant 0 : i32
    %c0_i32_0 = arith.constant 0 : i32
    return %arg0, %c0_i32 : i32, i32
  }
  func.func @transform_1(%arg0: i32, %arg1: i32) -> (i32, i32) {
    %c0_i32 = arith.constant 0 : i32
    %c0_i32_0 = arith.constant 0 : i32
    %c0_i32_1 = arith.constant 0 : i32
    return %c0_i32, %c0_i32_0 : i32, i32
  }
  func.func @transform_2(%arg0: i32, %arg1: i32) -> (i32, i32) {
    %c0_i32 = arith.constant 0 : i32
    %c0_i32_0 = arith.constant 0 : i32
    %c0_i32_1 = arith.constant 0 : i32
    return %c0_i32, %c0_i32_0 : i32, i32
  }
  func.func @transform_3(%arg0: i32, %arg1: i32) -> (i32, i32) {
    %c0_i32 = arith.constant 0 : i32
    %c0_i32_0 = arith.constant 0 : i32
    return %c0_i32, %arg1 : i32, i32
  }
  func.func @transform_4(%arg0: i32, %arg1: i32) -> (i32, i32) {
    %c0_i32 = arith.constant 0 : i32
    %c0_i32_0 = arith.constant 0 : i32
    return %c0_i32, %arg1 : i32, i32
  }
  func.func @transform_5(%arg0: i32, %arg1: i32) -> (i32, i32) {
    %c0_i32 = arith.constant 0 : i32
    %c0_i32_0 = arith.constant 0 : i32
    return %arg1, %c0_i32 : i32, i32
  }
  func.func @transform_6(%arg0: i32, %arg1: i32) -> (i32, i32) {
    %c0_i32 = arith.constant 0 : i32
    %c0_i32_0 = arith.constant 0 : i32
    %c0_i32_1 = arith.constant 0 : i32
    return %c0_i32, %c0_i32_0 : i32, i32
  }
  func.func @transform_7(%arg0: i32, %arg1: i32) -> (i32, i32) {
    %c0_i32 = arith.constant 0 : i32
    %c0_i32_0 = arith.constant 0 : i32
    return %arg0, %c0_i32 : i32, i32
  }
}

</mosaic_0001>

<bundles_post_ra>
// kernel: _lambda_.6
= control target key start
LH: loop header
LB: loop body
LE: loop exit
PB: predicated region body
PF: predicated region fallthrough
CT: control target
= control target key end

     0   :  { %vm27_vm0 = vcmask 261120   ;;  %v188_v15 = vmov 0.0   ;;  %vm189_vm1 = vmmov 0   ;;  %vm152_vm2 = vcmask 781312   ;;  %s253_s0 = inlined_call_operand.vmem [shape: f32[16,32], index: 0, kind: input, shape index: {}]   ;;  %s254_s3 = inlined_call_operand.vmem [shape: bf16[32,96], index: 3, kind: input, shape index: {}]   ;;  %s255_s1 = inlined_call_operand.vmem [shape: f32[1,32], index: 1, kind: input, shape index: {}]   ;;  %s256_s2 = inlined_call_operand.vmem [shape: f32[1,32], index: 2, kind: input, shape index: {}]   ;;  %s257_s4 = inlined_call_operand.vmem [shape: f32[1,96], index: 4, kind: input, shape index: {}]   ;;  %s258_s5 = inlined_call_operand.vmem [shape: bf16[16,96], index: 5, kind: output, shape index: {}]  }
   0x1   :  { %v25_v0 = vld [vmem:[%s253_s0] sm:$0xff]  ;;  %v26_v1 = vld [vmem:[%s253_s0 + $0x8] sm:$0xff]  ;;  %172 = vmatprep.subr.bf16.mxu0 %v188_v15  ;;  %176 = vmatprep.mubr.msk.bf16.mxu0 %vm189_vm1, %v188_v15 }
   0x2   :  { %v28_v2 = vsel %vm27_vm0, %v25_v0, 0.0  ;;  %v31_v3 = vsel %vm27_vm0, %v26_v1, 0.0  ;;  %v182_v14 = vld [vmem:[%s254_s3] sm:$0xff]   ;;  %v183_v16 = vld [vmem:[%s254_s3 + $0x8] sm:$0xff]  }
   0x3   :  { %29 = vadd.xlane.f32.xlu0 %v28_v2  ;;  %173 = vmatpush3.bf16.msra.mxu0 %v182_v14  ;;  %v159_v25 = vld [vmem:[%s255_s1] ss:$0 sm:$0xff] }
   0x4   :  { %174 = vmatprep.subr.bf16.mxu0 %v188_v15  ;;  %v160_v29 = vld [vmem:[%s256_s2] ss:$0 sm:$0xff] }
   0x5   :  { %v161_v35 = vld [vmem:[%s257_s4] ss:$0 sm:$0xff] }
   0x7   :  { %32 = vadd.xlane.f32.xlu0 %v31_v3  ;;  %175 = vmatpush3.bf16.msra.mxu0 %v183_v16 }
  0x90   :  { %v30_v4 = vpop.xlane.xlu0 %29 }
  0x91   :  { %v35_v5 = vmul.f32 0.03125, %v30_v4 }
  0x93   :  { %v37_v6 = vsub.f32 %v25_v0, %v35_v5 }
  0x94   :  { %v33_v7 = vpop.xlane.xlu0 %32 }
  0x95   :  { %v36_v8 = vmul.f32 0.03125, %v33_v7  ;;  %v39_v9 = vmul.f32 %v37_v6, %v37_v6 }
  0x97   :  { %v38_v10 = vsub.f32 %v26_v1, %v36_v8  ;;  %v41_v11 = vsel %vm27_vm0, %v39_v9, 0.0 }
  0x98   :  { %42 = vadd.xlane.f32.xlu1 %v41_v11 }
  0x99   :  { %v40_v12 = vmul.f32 %v38_v10, %v38_v10 }
  0x9b   :  { %v44_v13 = vsel %vm27_vm0, %v40_v12, 0.0 }
  0x9c   :  { %45 = vadd.xlane.f32.xlu1 %v44_v13 }
 0x125   :  { %v43_v17 = vpop.xlane.xlu1 %42 }
 0x126   :  { %v47_v18 = vmul.f32 0.03125, %v43_v17 }
 0x128   :  { %v49_v19 = vadd.f32 1e-05, %v47_v18 }
 0x129   :  { %v46_v20 = vpop.xlane.xlu1 %45 }
 0x12a   :  { %184 = vrsqrt.f32 %v49_v19  ;;  %v48_v21 = vmul.f32 0.03125, %v46_v20 }
 0x12c   :  { %v50_v22 = vadd.f32 1e-05, %v48_v21 }
 0x12e   :  { %186 = vrsqrt.f32 %v50_v22 }
 0x134   :  { %v185_v23 = vpop.eup %184 }
 0x135   :  { %v53_v24 = vmul.f32 %v185_v23, %v37_v6 }
 0x137   :  { %v62_v27 = vmul.f32 %v159_v25, %v53_v24 }
 0x138   :  { %v187_v26 = vpop.eup %186 }
 0x139   :  { %v54_v28 = vmul.f32 %v187_v26, %v38_v10  ;;  %v71_v31 = vadd.f32 %v160_v29, %v62_v27 }
 0x13b   :  { %v63_v30 = vmul.f32 %v159_v25, %v54_v28 }
 0x13d   :  { %v72_v32 = vadd.f32 %v160_v29, %v63_v30 }
 0x13f   :  { %v73_v33 = vpack.c.bf16 %v72_v32, %v71_v31 }
 0x141   :  { %74 = vst.msk [vmem:[#allocation2] sm:$0xff] %vm27_vm0, %v73_v33 }
 0x148   :  { %v75_v34 = vld [vmem:[#allocation2] sm:$0xff] }
 0x149   :  { %177 = vmatmul.mubr.msk.bf16.vlgmr.msra.gmra.mrb[0].mxu0 %vm27_vm0, %v75_v34 }
 0x21c   :  { %v137_v36 = vpop.f32.mrb[0].mxu0 }
 0x21d   :  { %v138_v37 = vadd.f32 %v161_v35, %v137_v36  ;;  %v178_v38 = vpop.f32.mrb[1].mxu0 }
 0x21e   :  { %v140_v39 = vpop.f32.mrb[2].mxu0 }
 0x21f   :  { %v167_v40 = vpack.c.bf16 %v138_v37, %v138_v37  ;;  %v141_v41 = vadd.f32 %v161_v35, %v140_v39  ;;  %v179_v42 = vpop.f32.mrb[3].mxu0 }
 0x221   :  { %153 = vst.msk [vmem:[%s258_s5] sm:$0xf] %vm152_vm2, %v167_v40  ;;  %v168_v43 = vpack.c.bf16 %v141_v41, %v141_v41 }
 0x223   :  { %154 = vst.msk [vmem:[%s258_s5 + $0x4] sm:$0xf] %vm152_vm2, %v168_v43 }

// kernel: _lambda_.7
= control target key start
LH: loop header
LB: loop body
LE: loop exit
PB: predicated region body
PF: predicated region fallthrough
CT: control target
= control target key end

     0   :  { %s885_s18 = smov 0   ;;  %s887_s19 = smov 0   ;;  %s977_s0 = inlined_call_operand.vmem [shape: bf16[8,8,24], index: 0, kind: input, shape index: {}, may-alias: {0,1}]   ;;  %s978_s1 = inlined_call_operand.vmem [shape: bf16[8,8,24], index: 1, kind: input, shape index: {}, may-alias: {0,1}]   ;;  %s979_s2 = inlined_call_operand.vmem [shape: bf16[32,32], index: 2, kind: input, shape index: {}]   ;;  %s980_s3 = inlined_call_operand.vmem [shape: f32[1,32], index: 3, kind: input, shape index: {}]   ;;  %s981_s4 = inlined_call_operand.vmem [shape: f32[16,32], index: 4, kind: input, shape index: {}]   ;;  %s982_s5 = inlined_call_operand.vmem [shape: f32[16,32], index: 5, kind: output, shape index: {}]  }
   0x1   :  { %s889_s20 = smov 0   ;;  %s891_s21 = smov 0  }
   0x2   :  { %s893_s22 = smov 0  }
   0x3 LB: > { %s33_s23 = sadd.s32 1, %s839_s20  ;;  %s41_s24 = sadd.s32 1, %s843_s21  ;;  %s847_s22 = sphi %s893_s22, %s15_s22   ;;  %s843_s21 = sphi %s891_s21, %s986_s21   ;;  %s839_s20 = sphi %s889_s20, %s985_s20   ;;  %s835_s19 = sphi %s887_s19, %s984_s19   ;;  %s831_s18 = sphi %s885_s18, %s983_s18  }
   0x4   : > { %p35_p0 = scmp.ge.s32.totalorder %s33_s23, 4  ;;  %p713_p1 = scmp.ge.s32.totalorder %s847_s22, 1 }
   0x5   : > { %p271_p2 = scmp.lt.s32.totalorder %s847_s22, 9 }
   0x6   : > { %s988_s23 = smov (%p35_p0, %s33_s23), 0  ;;  %s990_s24 = smov (!%p35_p0, %s41_s24), %s843_s21 }
   0x7   : > { %p272_p3 = pnand %p713_p1, %p271_p2  ;;  %p43_p4 = scmp.ge.s32.totalorder %s990_s24, 2 }
   0x8   : > { %s714_s25 = sshll.u32 (!%p272_p3), %s835_s19, 2  ;;  %p343_p5 = scmp.lt.s32.totalorder (!%p272_p3), %s831_s18, 3 }
   0x9   : > { %s992_s24 = smov (%p43_p4, %s990_s24), 0  ;;  %275 = sbr.rel (%p272_p3) target bundleno = 1163 (0x48b), region = 40 }
   0xa   : > { %s322_s26 = sadd.s32 (!%p272_p3), %s831_s18, %s714_s25  ;;  %p348_p6 = scmp.lt.s32.totalorder (!%p272_p3), %s835_s19, 1 }
   0xb   : > { %p323_p7 = scmp.lt.s32.totalorder (!%p272_p3), %s322_s26, 7  ;;  %p361_p8 = scmp.eq.s32.totalorder (!%p272_p3), %s831_s18, 0 }
  0x10   : > { %s994_s18 = smov (!%p343_p5, %s831_s18), 3  ;;  %s996_s26 = smov (!%p323_p7, %s322_s26), 7 }
  0x11   : > { %s718_s27 = sshll.u32 %s994_s18, 2  ;;  %s715_s28 = sshll.u32 %s996_s26, 2  ;;  %v722_v1 = vld [vmem:[%s980_s3] ss:$0 sm:$0xff] (%p361_p8)  ;;  %vm376_vm0 = vcmask (%p361_p8), 261120  }
  0x12   : > { %s924_s6 = scalar_lea.vmem %s979_s2, %s718_s27  ;;  %s329_s9 = scalar_lea.vmem %s977_s0, %s715_s28 }
  0x13   : > { %s340_s12 = scalar_lea.vmem %s978_s1, %s715_s28  ;;  %s998_s19 = smov (!%p348_p6, %s835_s19), 1 }
  0x14   : > { %s719_s13 = sshll.u32 %s998_s19, 3  ;;  %366 = sbr.rel (!%p361_p8) target bundleno = 27 (0x1b), region = 44 }
  0x15   : > { %s351_s16 = scalar_lea.vmem %s981_s4, %s719_s13  ;;  %s938_s25 = scalar_lea.vmem %s982_s5, %s719_s13 }
  0x16   : > { %v367_v0 = vld [vmem:[%s351_s16] sm:$0xff] (%p361_p8) }
  0x17   : > { %v375_v2 = vadd.f32 (%p361_p8), %v722_v1, %v367_v0 }
  0x19   : > { %377 = vst.msk [vmem:[%s938_s25] sm:$0xff] (%p361_p8), %vm376_vm0, %v375_v2 }
  0x1b PF: > { %v802_v3 = vld [vmem:[%s340_s12] ss:$0 sps:$4 sm:$0xff]   ;;  %v849_v4 = vmov 0.0   ;;  %vm384_vm1 = vcmask 64512   ;;  %s850_s19 = smov 120   ;;  %vm851_vm2 = vmmov 0  }
  0x1c   : > { %736 = vmatprep.subr.bf16.mxu0 %v849_v4  ;;  %742 = vmatprep.subr.bf16.mxu1 %v849_v4  ;;  %385 = vst.msk [vmem:[#allocation4] sm:$0xff] %vm384_vm1, %v849_v4  ;;  %v386_v7 = vld [vmem:[%s329_s9] sm:$0xf]  ;;  %vm381_vm3 = vcmask 7168   ;;  %v852_v14 = vmov -inf   ;;  %v853_v15 = vmov 0  }
  0x1d   : > { %392 = vrot.lane.b32.xlu0 %v802_v3, %s850_s19  ;;  %738 = vmatprep.mubr.msk.bf16.mxu0 %vm851_vm2, %v849_v4  ;;  %v388_v8 = vmul.bf16 1052065461, %v386_v7  ;;  %382 = vst.msk [vmem:[#allocation2] sm:$0xff] %vm381_vm3, %v852_v14  ;;  %383 = vst.msk [vmem:[#allocation3] sm:$0xff] %vm381_vm3, %v849_v4  ;;  %s854_s28 = smov 112   ;;  %vm478_vm4 = vcmask 1043456  }
  0x1e   : > { %744 = vmatprep.mubr.msk.bf16.mxu1 %vm851_vm2, %v849_v4  ;;  %800 = vset.pattern.permute.xlu1 %v853_v15  ;;  %v539_v27 = vld [vmem:[%s924_s6] sm:$0xf]  ;;  %vm587_vm5 = vcmask 261120  }
  0x1f   : > { %801 = vset.pattern.permute.xlu0 %v853_v15  ;;  %v544_v29 = vsel %vm478_vm4, %v539_v27, 0 }
  0x20   : > { %v537_v50 = vld [vmem:[%s938_s25] sm:$0xff] }
  0x23   : > { %v465_v38 = vld [vmem:[#allocation4] sm:$0xff] }
  0x24   : > { %v441_v16 = vld [vmem:[#allocation2] sm:$0xff]  ;;  %v457_v32 = vld [vmem:[#allocation3] sm:$0xff] }
  0x8f   : > { %v393_v5 = vpop.permute.xlu0 %392 }
  0x90   : > { %v399_v6 = vsel %vm384_vm1, %v393_v5, 0 }
  0x91   : > { %737 = vmatpush3.bf16.xpose.msra.mxu0 %v399_v6 }
  0x98   : > { %739 = vmatmul.mubr.msk.bf16.vlgmr.msra.gmra.mrb[0].mxu0 %vm384_vm1, %v388_v8 }
 0x16b   : > { %v435_v9 = vpop.f32.mrb[0].mxu0 }
 0x16c   : > { %v740_v10 = vpop.f32.mrb[1].mxu0  ;;  %v442_v11 = vsel %vm384_vm1, %v435_v9, -inf }
 0x16d   : > { %443 = vmax.xlane.f32.xlu0 %v442_v11  ;;  %v438_v12 = vpop.f32.mrb[2].mxu0 }
 0x16e   : > { %v741_v13 = vpop.f32.mrb[3].mxu0 }
 0x1fa   : > { %v444_v17 = vpop.xlane.xlu0 %443 }
 0x1fb   : > { %v445_v18 = vmax.f32 %v441_v16, %v444_v17 }
 0x1fd   : > { %v446_v19 = vsub.f32 %v441_v16, %v445_v18  ;;  %524 = vst.msk [vmem:[#allocation2] sm:$0xff] %vm381_vm3, %v445_v18  ;;  %451 = vperm.xlu1 %800, %v445_v18  }
 0x1ff   : > { %v447_v20 = vmul.f32 1.442695, %v446_v19 }
 0x201   : > { %803 = vpow2.f32 %v447_v20  ;;  %473 = vrot.lane.b32.xlu1 %v802_v3, %s854_s28 }
 0x20b   : > { %v804_v21 = vpop.eup %803 }
 0x20c   : > { %468 = vperm.xlu0 %801, %v804_v21   ;;  %v458_v33 = vmul.f32 %v804_v21, %v457_v32 }
 0x27c   : > { %v452_v22 = vpop.permute.xlu1 %451 }
 0x27d   : > { %v454_v23 = vsub.f32 %v435_v9, %v452_v22 }
 0x27f   : > { %v455_v24 = vmul.f32 1.442695, %v454_v23 }
 0x280   : > { %v474_v25 = vpop.permute.xlu1 %473 }
 0x281   : > { %805 = vpow2.f32 %v455_v24  ;;  %v480_v26 = vsel %vm478_vm4, %v474_v25, 0 }
 0x282   : > { %743 = vmatpush3.bf16.msra.mxu1 %v480_v26 }
 0x283   : > { %748 = vmatprep.subr.bf16.mxu1 %v849_v4 }
 0x28b   : > { %v806_v28 = vpop.eup %805  ;;  %v469_v39 = vpop.permute.xlu0 %468 }
 0x28c   : > { %v459_v30 = vsel %vm384_vm1, %v806_v28, 0.0  ;;  %v472_v31 = vpack.c.bf16 %v806_v28, %v806_v28  ;;  %v471_v40 = vmul.f32 %v469_v39, %v465_v38 }
 0x28d   : > { %460 = vadd.xlane.f32.xlu1 %v459_v30 }
 0x28e   : > { %745 = vmatmul.mubr.msk.bf16.vlgmr.msra.gmra.mrb[0].mxu1 %vm384_vm1, %v472_v31 }
 0x28f   : > { %749 = vmatpush3.bf16.msra.mxu1 %v544_v29  ;;  %750 = vmatprep.mubr.msk.bf16.mxu1 %vm851_vm2, %v849_v4 }
 0x31a   : > { %v461_v34 = vpop.xlane.xlu1 %460 }
 0x31b   : > { %v462_v35 = vadd.f32 %v461_v34, %v458_v33 }
 0x31d   : > { %464 = vst.msk [vmem:[#allocation3] sm:$0xff] %vm381_vm3, %v462_v35 }
 0x324   : > { %v529_v36 = vld [vmem:[#allocation3] sm:$0xff] }
 0x325   : > { %807 = vrcp.f32 %v529_v36 }
 0x32f   : > { %v808_v37 = vpop.eup %807 }
 0x330   : > { %533 = vperm.xlu1 %800, %v808_v37  }
 0x361   : > { %v516_v41 = vpop.f32.mrb[0].mxu1 }
 0x362   : > { %v522_v42 = vadd.f32 %v516_v41, %v471_v40  ;;  %v746_v43 = vpop.f32.mrb[1].mxu1 }
 0x363   : > { %v519_v44 = vpop.f32.mrb[2].mxu1 }
 0x364   : > { %523 = vst.msk [vmem:[#allocation4] sm:$0xff] %vm384_vm1, %v522_v42  ;;  %v747_v45 = vpop.f32.mrb[3].mxu1 }
 0x36b   : > { %v528_v46 = vld [vmem:[#allocation4] sm:$0xff] }
 0x3af   : > { %v534_v47 = vpop.permute.xlu1 %533 }
 0x3b0   : > { %v536_v48 = vmul.f32 %v534_v47, %v528_v46 }
 0x3b2   : > { %v538_v49 = vpack.c.bf16 %v536_v48, %v536_v48 }
 0x3b4   : > { %751 = vmatmul.mubr.msk.bf16.vlgmr.msra.gmra.mrb[4].mxu1 %vm384_vm1, %v538_v49 }
 0x487   : > { %v580_v51 = vpop.f32.mrb[4].mxu1 }
 0x488   : > { %v586_v52 = vadd.f32 %v580_v51, %v537_v50  ;;  %v752_v53 = vpop.f32.mrb[5].mxu1 }
 0x489   : > { %v583_v54 = vpop.f32.mrb[6].mxu1 }
 0x48a   : > { %588 = vst.msk [vmem:[%s938_s25] sm:$0xff] %vm587_vm5, %v586_v52  ;;  %v753_v55 = vpop.f32.mrb[7].mxu1 }
 0x48b PF: > { %s15_s22 = sadd.s32 1, %s847_s22   ;;  %s983_s18 = smov %s839_s20 }
 0x48c   : > { %p12_p9 = scmp.ge.s32.totalorder %s15_s22, 10   ;;  %s984_s19 = smov %s843_s21 }
 0x48d   : > { %s985_s20 = smov %s988_s23  ;;  %s986_s21 = smov %s992_s24 }
 0x48e   :  { %14 = sbr.rel (!%p12_p9) target bundleno = 3 (0x3), region = 91 }

// kernel: _lambda_.8
= control target key start
LH: loop header
LB: loop body
LE: loop exit
PB: predicated region body
PF: predicated region fallthrough
CT: control target
= control target key end

     0   :  { %s1354_s24 = smov 0   ;;  %s1356_s25 = smov 0   ;;  %s1520_s0 = inlined_call_operand.vmem [shape: f32[16,32], index: 0, kind: input, shape index: {}]   ;;  %s1521_s1 = inlined_call_operand.vmem [shape: f32[1,32], index: 1, kind: input, shape index: {}]   ;;  %s1522_s2 = inlined_call_operand.vmem [shape: f32[1,32], index: 2, kind: input, shape index: {}]   ;;  %s1523_s3 = inlined_call_operand.vmem [shape: bf16[32,2048], index: 3, kind: input, shape index: {}]   ;;  %s1524_s4 = inlined_call_operand.vmem [shape: f32[1,2048], index: 4, kind: input, shape index: {}]   ;;  %s1525_s5 = inlined_call_operand.vmem [shape: bf16[2048,32], index: 5, kind: input, shape index: {}]   ;;  %s1526_s6 = inlined_call_operand.vmem [shape: f32[1,32], index: 6, kind: input, shape index: {}]   ;;  %s1527_s7 = inlined_call_operand.vmem [shape: f32[16,32], index: 7, kind: output, shape index: {}]  }
   0x1   :  { %s1358_s26 = smov 0   ;;  %s1360_s27 = smov 0  }
   0x2   :  { %s1362_s28 = smov 0  }
   0x3 LB: > { %s26_s29 = sadd.s32 1, %s1307_s27  ;;  %p111_p1 = scmp.ne.s32.totalorder %s1299_s25, %s1295_s24  ;;  %s1311_s28 = sphi %s1362_s28, %s17_s28   ;;  %s1307_s27 = sphi %s1360_s27, %s1531_s27   ;;  %s1303_s26 = sphi %s1358_s26, %s1530_s26   ;;  %s1299_s25 = sphi %s1356_s25, %s1529_s25   ;;  %s1295_s24 = sphi %s1354_s24, %s1528_s24  }
   0x4   : > { %p27_p0 = scmp.ge.s32.totalorder %s26_s29, 4  ;;  %p112_p2 = scmp.eq.s32.totalorder %s1311_s28, 0 }
   0x5   : > { %s104_s8 = sadd.s32 1, %s1299_s25  ;;  %p1080_p5 = scmp.ge.s32.totalorder %s1311_s28, 4 }
   0x6   : > { %s1533_s29 = smov (%p27_p0, %s26_s29), 0  ;;  %p113_p3 = por %p112_p2, %p111_p1 }
   0x7   : > { %s101_s30 = ssub.s32 %s1307_s27, %s1533_s29  ;;  %254 = sbr.rel (%p1080_p5) target bundleno = 22 (0x16), region = 32 }
   0x8   : > { %p102_p4 = scmp.eq.s32.totalorder %s101_s30, 0 }
   0xa   : > { %s1389_s9 = scalar_select %p102_p4, %s1299_s25, %s104_s8  }
   0xe   : > { %257 = sbr.rel (!%p113_p3) target bundleno = 22 (0x16), region = 36  ;;  %s259_s10 = sand.u32 (%p113_p3), 1, %s1299_s25  }
   0xf   : > { %s1139_s11 = sshll.u32 (%p113_p3), %s1307_s27, 4  ;;  %s1081_s12 = sshll.u32 (%p113_p3), %s259_s10, 6 }
  0x10   : > { %s264_s15 = scalar_lea.vmem (%p113_p3), %s1523_s3, %s1139_s11  ;;  %s261_s16 = scalar_lea.vmem (%p113_p3), [#allocation3], %s1081_s12 }
  0x11   : > { %v277_v0 = vld [vmem:[%s264_s15] sm:$0xff] (%p113_p3)  ;;  %v279_v1 = vld [vmem:[%s264_s15 + $0x8] sm:$0xff] (%p113_p3) }
  0x12   : > { %v281_v2 = vld [vmem:[%s264_s15 + $0x40] sm:$0xff] (%p113_p3)  ;;  %278 = vst [vmem:[%s261_s16] sm:$0xff] (%p113_p3), %v277_v0  ;;  %280 = vst [vmem:[%s261_s16 + $0x8] sm:$0xff] (%p113_p3), %v279_v1  ;;  %v283_v3 = vld [vmem:[%s264_s15 + $0x48] sm:$0xff] (%p113_p3) }
  0x13   : > { %282 = vst [vmem:[%s261_s16 + $0x10] sm:$0xff] (%p113_p3), %v281_v2  ;;  %v285_v4 = vld [vmem:[%s264_s15 + $0x80] sm:$0xff] (%p113_p3)  ;;  %v287_v5 = vld [vmem:[%s264_s15 + $0x88] sm:$0xff] (%p113_p3)  ;;  %284 = vst [vmem:[%s261_s16 + $0x18] sm:$0xff] (%p113_p3), %v283_v3 }
  0x14   : > { %286 = vst [vmem:[%s261_s16 + $0x20] sm:$0xff] (%p113_p3), %v285_v4  ;;  %288 = vst [vmem:[%s261_s16 + $0x28] sm:$0xff] (%p113_p3), %v287_v5  ;;  %v289_v6 = vld [vmem:[%s264_s15 + $0xc0] sm:$0xff] (%p113_p3)  ;;  %v291_v7 = vld [vmem:[%s264_s15 + $0xc8] sm:$0xff] (%p113_p3) }
  0x15   : > { %290 = vst [vmem:[%s261_s16 + $0x30] sm:$0xff] %v289_v6  ;;  %292 = vst [vmem:[%s261_s16 + $0x38] sm:$0xff] %v291_v7 }
  0x16 PF: > { %p1084_p6 = scmp.ge.s32.totalorder %s1311_s28, 1  ;;  %p314_p7 = scmp.lt.s32.totalorder %s1311_s28, 5 }
  0x18   : > { %p315_p8 = pnand %p1084_p6, %p314_p7 }
  0x19   : > { %s321_s17 = sand.u32 (!%p315_p8), 1, %s1295_s24   ;;  %s1086_s18 = sshll.u32 (!%p315_p8), %s1303_s26, 2 }
  0x1a   : > { %318 = sbr.rel (%p315_p8) target bundleno = 809 (0x329), region = 67  ;;  %s1085_s19 = sshll.u32 (!%p315_p8), %s321_s17, 6 }
  0x1b   : > { %p374_p9 = scmp.lt.s32.totalorder (!%p315_p8), %s1086_s18, 15  ;;  %s1087_s20 = sshll.u32 (!%p315_p8), %s1303_s26, 6 }
  0x1c   : > { %p379_p10 = scmp.lt.s32.totalorder (!%p315_p8), %s1087_s20, 255  ;;  %s1413_s24 = scalar_lea.vmem (!%p315_p8), [#allocation3], %s1085_s19 }
  0x1d   : > { %p1089_p11 = scmp.ne.s32.totalorder (!%p315_p8), %s1303_s26, 0 }
  0x21   : > { %s1535_s18 = smov (!%p374_p9, %s1086_s18), 15  ;;  %s1537_s20 = smov (!%p379_p10, %s1087_s20), 255 }
  0x22   : > { %s376_s23 = scalar_lea.vmem %s1524_s4, %s1535_s18  ;;  %s1088_s30 = sshll.u32 %s1537_s20, 2  ;;  %v395_v8 = vld [vmem:[%s1520_s0] sm:$0xff] (!%p1089_p11)  ;;  %vm397_vm0 = vcmask (!%p1089_p11), 261120   ;;  %v396_v10 = vld [vmem:[%s1520_s0 + $0x8] sm:$0xff] (!%p1089_p11) }
  0x23   : > { %s1411_s11 = scalar_lea.vmem %s1525_s5, %s1088_s30  ;;  %394 = sbr.rel (%p1089_p11) target bundleno = 355 (0x163), region = 75  ;;  %v1092_v9 = vld [vmem:[%s1526_s6] ss:$0 sm:$0xff] (!%p1089_p11)  ;;  %v398_v11 = vsel (!%p1089_p11), %vm397_vm0, %v395_v8, 0.0  ;;  %v401_v14 = vsel (!%p1089_p11), %vm397_vm0, %v396_v10, 0.0 }
  0x24   : > { %v452_v12 = vadd.f32 (!%p1089_p11), %v1092_v9, %v395_v8  ;;  %v453_v13 = vadd.f32 (!%p1089_p11), %v1092_v9, %v396_v10  ;;  %399 = vadd.xlane.f32.xlu0 (!%p1089_p11), %v398_v11  ;;  %v1090_v33 = vld [vmem:[%s1521_s1] ss:$0 sm:$0xff] (!%p1089_p11) }
  0x25   : > { %v1091_v37 = vld [vmem:[%s1522_s2] ss:$0 sm:$0xff] (!%p1089_p11) }
  0x26   : > { %454 = vst.msk [vmem:[%s1527_s7] sm:$0xff] (!%p1089_p11), %vm397_vm0, %v452_v12  ;;  %455 = vst.msk [vmem:[%s1527_s7 + $0x8] sm:$0xff] (!%p1089_p11), %vm397_vm0, %v453_v13 }
  0x28   : > { %402 = vadd.xlane.f32.xlu0 (!%p1089_p11), %v401_v14 }
  0xb1   : > { %v400_v15 = vpop.xlane.xlu0 %399 }
  0xb2   : > { %v405_v16 = vmul.f32 0.03125, %v400_v15 }
  0xb4   : > { %v407_v17 = vsub.f32 %v395_v8, %v405_v16 }
  0xb5   : > { %v403_v18 = vpop.xlane.xlu0 %402 }
  0xb6   : > { %v406_v19 = vmul.f32 0.03125, %v403_v18  ;;  %v409_v20 = vmul.f32 %v407_v17, %v407_v17 }
  0xb8   : > { %v408_v21 = vsub.f32 %v396_v10, %v406_v19  ;;  %v411_v22 = vsel %vm397_vm0, %v409_v20, 0.0 }
  0xb9   : > { %412 = vadd.xlane.f32.xlu1 %v411_v22 }
  0xba   : > { %v410_v23 = vmul.f32 %v408_v21, %v408_v21 }
  0xbc   : > { %v414_v24 = vsel %vm397_vm0, %v410_v23, 0.0 }
  0xbd   : > { %415 = vadd.xlane.f32.xlu1 %v414_v24 }
 0x146   : > { %v413_v25 = vpop.xlane.xlu1 %412 }
 0x147   : > { %v417_v26 = vmul.f32 0.03125, %v413_v25 }
 0x149   : > { %v419_v27 = vadd.f32 1e-05, %v417_v26 }
 0x14a   : > { %v416_v28 = vpop.xlane.xlu1 %415 }
 0x14b   : > { %1225 = vrsqrt.f32 %v419_v27  ;;  %v418_v29 = vmul.f32 0.03125, %v416_v28 }
 0x14d   : > { %v420_v30 = vadd.f32 1e-05, %v418_v29 }
 0x14f   : > { %1227 = vrsqrt.f32 %v420_v30 }
 0x155   : > { %v1226_v31 = vpop.eup %1225 }
 0x156   : > { %v423_v32 = vmul.f32 %v1226_v31, %v407_v17 }
 0x158   : > { %v432_v35 = vmul.f32 %v1090_v33, %v423_v32 }
 0x159   : > { %v1228_v34 = vpop.eup %1227 }
 0x15a   : > { %v424_v36 = vmul.f32 %v1228_v34, %v408_v21  ;;  %v441_v39 = vadd.f32 %v1091_v37, %v432_v35 }
 0x15c   : > { %v433_v38 = vmul.f32 %v1090_v33, %v424_v36 }
 0x15e   : > { %v442_v40 = vadd.f32 %v1091_v37, %v433_v38 }
 0x160   : > { %v443_v41 = vpack.c.bf16 %v442_v40, %v441_v39 }
 0x162   : > { %444 = vst.msk [vmem:[#allocation2] sm:$0xff] %vm397_vm0, %v443_v41 }
 0x163 PF: > { %v1229_v42 = vld [vmem:[%s1413_s24 + $0x4] ss:$16 sps:$4 sm:$0xff]   ;;  %v1231_v43 = vld [vmem:[%s1413_s24 + $0xc] ss:$16 sps:$4 sm:$0xff]   ;;  %v1313_v44 = vmov 0   ;;  %vm527_vm1 = vcmask 261120   ;;  %v467_v20 = vlaneseq }
 0x164   : > { %563 = vmatprep.mubr.bf16.mxu0 %v1313_v44  ;;  %606 = vmatprep.mubr.bf16.mxu1 %v1313_v44  ;;  %v1233_v45 = vld [vmem:[%s1413_s24] ss:$16 sps:$4 sm:$0xff]   ;;  %v1234_v46 = vld [vmem:[%s1413_s24 + $0x8] ss:$16 sps:$4 sm:$0xff]   ;;  %v1235_v47 = vld [vmem:[%s1413_s24 + $0x24] ss:$16 sps:$4 sm:$0xff]  }
 0x165   : > { %531 = vmatprep.subr.bf16.mxu0 %v1229_v42  ;;  %574 = vmatprep.subr.bf16.mxu1 %v1231_v43  ;;  %v1237_v48 = vld [vmem:[%s1413_s24 + $0x2c] ss:$16 sps:$4 sm:$0xff]   ;;  %v1239_v49 = vld [vmem:[%s1413_s24 + $0x20] ss:$16 sps:$4 sm:$0xff]   ;;  %v1240_v50 = vld [vmem:[%s1413_s24 + $0x28] ss:$16 sps:$4 sm:$0xff]  }
 0x166   : > { %532 = vmatpush1.bf16.msra.mxu0 %v1233_v45  ;;  %575 = vmatpush1.bf16.msra.mxu1 %v1234_v46  ;;  %v1241_v52 = vld [vmem:[%s1411_s11 + $0x40] sm:$0xff]   ;;  %v1245_v56 = vld [vmem:[%s1411_s11 + $0x48] sm:$0xff]   ;;  %v1249_v60 = vld [vmem:[%s1411_s11 + $0x50] sm:$0xff]   ;;  %v468_v21 = vshrl.u32 %v467_v20, 7 }
 0x167   : > { %533 = vmatprep.subr.bf16.mxu0 %v1235_v47  ;;  %576 = vmatprep.subr.bf16.mxu1 %v1237_v48  ;;  %v1242_v53 = vld [vmem:[%s1411_s11 + $0xc0] sm:$0xff]   ;;  %v1246_v57 = vld [vmem:[%s1411_s11 + $0xc8] sm:$0xff]   ;;  %v1250_v61 = vld [vmem:[%s1411_s11 + $0xd0] sm:$0xff]  }
 0x168   : > { %v1243_v54 = vld [vmem:[%s1411_s11] sm:$0xff]   ;;  %v1247_v58 = vld [vmem:[%s1411_s11 + $0x8] sm:$0xff]   ;;  %v1251_v62 = vld [vmem:[%s1411_s11 + $0x10] sm:$0xff]   ;;  %v469_v22 = vsub.s32 0, %v468_v21  ;;  %v477_v23 = vsub.s32 2, %v468_v21  ;;  %v473_v25 = vsub.s32 1, %v468_v21 }
 0x169   : > { %v456_v51 = vld [vmem:[#allocation2] sm:$0xff]  ;;  %v1248_v59 = vld [vmem:[%s1411_s11 + $0x88] sm:$0xff]   ;;  %v1252_v63 = vld [vmem:[%s1411_s11 + $0x90] sm:$0xff]   ;;  %v481_v26 = vsub.s32 3, %v468_v21 }
 0x16a   : > { %534 = vmatpush1.bf16.msra.mxu0 %v1239_v49  ;;  %577 = vmatpush1.bf16.msra.mxu1 %v1240_v50  ;;  %v1244_v55 = vld [vmem:[%s1411_s11 + $0x80] sm:$0xff]   ;;  %v1253_v0 = vld [vmem:[%s1411_s11 + $0x58] sm:$0xff]   ;;  %v1261_v8 = vld [vmem:[%s1411_s11 + $0x68] sm:$0xff]  }
 0x16b   : > { %1140 = vmatprep.subr.bf16.mxu0 %v1241_v52  ;;  %1162 = vmatprep.subr.bf16.mxu1 %v1242_v53  ;;  %v1254_v1 = vld [vmem:[%s1411_s11 + $0xd8] sm:$0xff]   ;;  %v1257_v4 = vld [vmem:[%s1411_s11 + $0x60] sm:$0xff]   ;;  %v1262_v9 = vld [vmem:[%s1411_s11 + $0xe8] sm:$0xff]  }
 0x16c   : > { %v1255_v2 = vld [vmem:[%s1411_s11 + $0x18] sm:$0xff]   ;;  %v1258_v5 = vld [vmem:[%s1411_s11 + $0xe0] sm:$0xff]   ;;  %v1263_v10 = vld [vmem:[%s1411_s11 + $0x28] sm:$0xff]  }
 0x16d   : > { %1101 = vmatmul.mubr.msk.bf16.vlgmr.msra.gmra.mrb[0].mxu0 %vm527_vm1, %v456_v51  ;;  %1102 = vmatmul.mubr.msk.bf16.vlgmr.msra.gmra.mrb[0].mxu1 %vm527_vm1, %v456_v51  ;;  %v1256_v3 = vld [vmem:[%s1411_s11 + $0x98] sm:$0xff]   ;;  %v1259_v6 = vld [vmem:[%s1411_s11 + $0x20] sm:$0xff]   ;;  %v1264_v11 = vld [vmem:[%s1411_s11 + $0xa8] sm:$0xff]  }
 0x16e   : > { %1141 = vmatpush3.bf16.msra.mxu0 %v1243_v54  ;;  %1163 = vmatpush3.bf16.msra.mxu1 %v1244_v55  ;;  %v1260_v7 = vld [vmem:[%s1411_s11 + $0xa0] sm:$0xff]   ;;  %v1265_v12 = vld [vmem:[%s1411_s11 + $0x70] sm:$0xff]   ;;  %v1269_v16 = vld [vmem:[%s1411_s11 + $0x78] sm:$0xff]  }
 0x16f   : > { %1142 = vmatprep.subr.bf16.mxu0 %v1245_v56  ;;  %1164 = vmatprep.subr.bf16.mxu1 %v1246_v57  ;;  %v1266_v13 = vld [vmem:[%s1411_s11 + $0xf0] sm:$0xff]   ;;  %v1270_v17 = vld [vmem:[%s1411_s11 + $0xf8] sm:$0xff]   ;;  %v465_v24 = vld [vmem:[%s376_s23] sm:$0xf] }
 0x170   : > { %v1267_v14 = vld [vmem:[%s1411_s11 + $0x30] sm:$0xff]   ;;  %v1271_v18 = vld [vmem:[%s1411_s11 + $0x38] sm:$0xff]   ;;  %v470_v27 = vrot.slane %v465_v24, %v469_v22  ;;  %v478_v28 = vrot.slane %v465_v24, %v477_v23  ;;  %v474_v29 = vrot.slane %v465_v24, %v473_v25  ;;  %v482_v30 = vrot.slane %v465_v24, %v481_v26 }
 0x171   : > { %v1268_v15 = vld [vmem:[%s1411_s11 + $0xb0] sm:$0xff]   ;;  %v1272_v19 = vld [vmem:[%s1411_s11 + $0xb8] sm:$0xff]  }
 0x172   : > { %1143 = vmatpush3.bf16.msra.mxu0 %v1247_v58  ;;  %1165 = vmatpush3.bf16.msra.mxu1 %v1248_v59 }
 0x173   : > { %1144 = vmatprep.subr.bf16.mxu0 %v1249_v60  ;;  %1166 = vmatprep.subr.bf16.mxu1 %v1250_v61 }
 0x176   : > { %1145 = vmatpush3.bf16.msra.mxu0 %v1251_v62  ;;  %1167 = vmatpush3.bf16.msra.mxu1 %v1252_v63 }
 0x177   : > { %1146 = vmatprep.subr.bf16.mxu0 %v1253_v0  ;;  %1168 = vmatprep.subr.bf16.mxu1 %v1254_v1 }
 0x17a   : > { %1147 = vmatpush3.bf16.msra.mxu0 %v1255_v2  ;;  %1169 = vmatpush3.bf16.msra.mxu1 %v1256_v3  ;;  %v625_v3 = vld [vmem:[%s1527_s7] sm:$0xff] }
 0x17b   : > { %1148 = vmatprep.subr.bf16.mxu0 %v1257_v4  ;;  %1170 = vmatprep.subr.bf16.mxu1 %v1258_v5 }
 0x17e   : > { %1149 = vmatpush3.bf16.msra.mxu0 %v1259_v6  ;;  %1171 = vmatpush3.bf16.msra.mxu1 %v1260_v7 }
 0x17f   : > { %1150 = vmatprep.subr.bf16.mxu0 %v1261_v8  ;;  %1172 = vmatprep.subr.bf16.mxu1 %v1262_v9  ;;  %v626_v9 = vld [vmem:[%s1527_s7 + $0x8] sm:$0xff] }
 0x182   : > { %1151 = vmatpush3.bf16.msra.mxu0 %v1263_v10  ;;  %1173 = vmatpush3.bf16.msra.mxu1 %v1264_v11 }
 0x183   : > { %1152 = vmatprep.subr.bf16.mxu0 %v1265_v12  ;;  %1174 = vmatprep.subr.bf16.mxu1 %v1266_v13 }
 0x186   : > { %1153 = vmatpush3.bf16.msra.mxu0 %v1267_v14  ;;  %1175 = vmatpush3.bf16.msra.mxu1 %v1268_v15 }
 0x187   : > { %1154 = vmatprep.subr.bf16.mxu0 %v1269_v16  ;;  %1176 = vmatprep.subr.bf16.mxu1 %v1270_v17 }
 0x18a   : > { %1155 = vmatpush3.bf16.msra.mxu0 %v1271_v18  ;;  %1177 = vmatpush3.bf16.msra.mxu1 %v1272_v19 }
 0x240   : > { %v565_v31 = vpop.f32.mrb[0].mxu0  ;;  %v608_v32 = vpop.f32.mrb[0].mxu1 }
 0x241   : > { %v566_v33 = vadd.f32 %v565_v31, %v470_v27  ;;  %v609_v34 = vadd.f32 %v608_v32, %v478_v28  ;;  %v567_v35 = vpop.f32.mrb[1].mxu0  ;;  %v610_v36 = vpop.f32.mrb[1].mxu1 }
 0x242   : > { %v568_v37 = vadd.f32 %v567_v35, %v474_v29  ;;  %v611_v38 = vadd.f32 %v610_v36, %v482_v30  ;;  %v569_v39 = vpop.f32.mrb[2].mxu0  ;;  %v612_v40 = vpop.f32.mrb[2].mxu1 }
 0x243   : > { %v570_v41 = vadd.f32 %v569_v39, %v470_v27  ;;  %v613_v42 = vadd.f32 %v612_v40, %v478_v28  ;;  %v571_v43 = vpop.f32.mrb[3].mxu0  ;;  %v614_v44 = vpop.f32.mrb[3].mxu1  ;;  %v617_v47 = vmax.f32 %v566_v33, 0.0  ;;  %v619_v48 = vmax.f32 %v609_v34, 0.0 }
 0x244   : > { %v572_v45 = vadd.f32 %v571_v43, %v474_v29  ;;  %v615_v46 = vadd.f32 %v614_v44, %v482_v30  ;;  %v618_v51 = vmax.f32 %v568_v37, 0.0  ;;  %v620_v52 = vmax.f32 %v611_v38, 0.0 }
 0x245   : > { %v621_v49 = vmax.f32 %v570_v41, 0.0  ;;  %v623_v50 = vmax.f32 %v613_v42, 0.0 }
 0x246   : > { %v622_v53 = vmax.f32 %v572_v45, 0.0  ;;  %v624_v54 = vmax.f32 %v615_v46, 0.0 }
 0x247   : > { %v627_v55 = vpack.c.bf16 %v621_v49, %v617_v47  ;;  %v629_v56 = vpack.c.bf16 %v623_v50, %v619_v48 }
 0x248   : > { %v628_v57 = vpack.c.bf16 %v622_v53, %v618_v51  ;;  %v630_v58 = vpack.c.bf16 %v624_v54, %v620_v52 }
 0x24a   : > { %919 = vmatprep.mubr.bf16.mxu0 %v628_v57  ;;  %960 = vmatprep.mubr.bf16.mxu1 %v630_v58 }
 0x24b   : > { %920 = vmatmul.mubr.bf16.vlgmr.msra.gmra.mrb[4].mxu0 %v627_v55  ;;  %961 = vmatmul.mubr.bf16.vlgmr.msra.gmra.mrb[4].mxu1 %v629_v56 }
 0x31e   : > { %v1156_v59 = vpop.f32.mrb[4].mxu0  ;;  %v1178_v60 = vpop.f32.mrb[4].mxu1 }
 0x31f   : > { %v1157_v61 = vpop.f32.mrb[5].mxu0  ;;  %v1179_v62 = vpop.f32.mrb[5].mxu1 }
 0x320   : > { %v1158_v63 = vadd.f32 %v1157_v61, %v1156_v59  ;;  %v1180_v0 = vadd.f32 %v1179_v62, %v1178_v60  ;;  %v1159_v1 = vpop.f32.mrb[6].mxu0  ;;  %v1181_v2 = vpop.f32.mrb[6].mxu1 }
 0x321   : > { %v1160_v4 = vpop.f32.mrb[7].mxu0  ;;  %v1182_v5 = vpop.f32.mrb[7].mxu1 }
 0x322   : > { %v963_v6 = vadd.f32 %v1180_v0, %v1158_v63  ;;  %v1161_v7 = vadd.f32 %v1160_v4, %v1159_v1  ;;  %v1183_v8 = vadd.f32 %v1182_v5, %v1181_v2 }
 0x324   : > { %v969_v10 = vadd.f32 %v963_v6, %v625_v3  ;;  %v966_v11 = vadd.f32 %v1183_v8, %v1161_v7 }
 0x326   : > { %971 = vst.msk [vmem:[%s1527_s7] sm:$0xff] %vm527_vm1, %v969_v10  ;;  %v970_v12 = vadd.f32 %v966_v11, %v626_v9 }
 0x328   : > { %972 = vst.msk [vmem:[%s1527_s7 + $0x8] sm:$0xff] %vm527_vm1, %v970_v12 }
 0x329 PF: > { %s17_s28 = sadd.s32 1, %s1311_s28   ;;  %s1528_s24 = smov %s1299_s25 }
 0x32a   : > { %p14_p12 = scmp.ge.s32.totalorder %s17_s28, 6   ;;  %s1529_s25 = smov %s1389_s9 }
 0x32b   : > { %s1530_s26 = smov %s1307_s27  ;;  %s1531_s27 = smov %s1533_s29 }
 0x32c   :  { %16 = sbr.rel (!%p14_p12) target bundleno = 3 (0x3), region = 119 }

// kernel: _lambda_.11
= control target key start
LH: loop header
LB: loop body
LE: loop exit
PB: predicated region body
PF: predicated region fallthrough
CT: control target
= control target key end

     0   :  { %12 = vsyncpa [#allocation5], 0  ;;  %s1387_s24 = smov 0   ;;  %s1389_s25 = smov 0   ;;  %s1564_s0 = inlined_call_operand.vmem [shape: f32[16,32], index: 0, kind: input, shape index: {}]   ;;  %s1565_s1 = inlined_call_operand.vmem [shape: f32[1,32], index: 1, kind: input, shape index: {}]   ;;  %s1566_s2 = inlined_call_operand.vmem [shape: f32[1,32], index: 2, kind: input, shape index: {}]   ;;  %s1567_s3 = inlined_call_operand.vmem [shape: bf16[32,2048], index: 3, kind: input, shape index: {}]   ;;  %s1568_s4 = inlined_call_operand.vmem [shape: f32[1,2048], index: 4, kind: input, shape index: {}]   ;;  %s1569_s5 = inlined_call_operand.vmem [shape: bf16[2048,32], index: 5, kind: input, shape index: {}]   ;;  %s1570_s6 = inlined_call_operand.vmem [shape: f32[1,32], index: 6, kind: input, shape index: {}]   ;;  %s1571_s7 = inlined_call_operand.hbm [shape: f32[16,32], index: 7, kind: output, shape index: {}]  }
   0x1   :  { %s1391_s26 = smov 0   ;;  %s1393_s27 = smov 0  }
   0x2   :  { %s1395_s28 = smov 0  }
   0x3 LB: > { %s1068_s29 = sadd.s32 4294967295, %s1341_s28   ;;  %s27_s30 = sadd.s32 1, %s1337_s27  ;;  %s1341_s28 = sphi %s1395_s28, %s18_s28   ;;  %s1337_s27 = sphi %s1393_s27, %s1576_s27   ;;  %s1333_s26 = sphi %s1391_s26, %s1575_s26   ;;  %s1329_s25 = sphi %s1389_s25, %s1574_s25   ;;  %s1325_s24 = sphi %s1387_s24, %s1573_s24  }
   0x4   : > { %p28_p0 = scmp.ge.s32.totalorder %s27_s30, 4  ;;  %p112_p1 = scmp.ne.s32.totalorder %s1329_s25, %s1325_s24 }
   0x5   : > { %p113_p2 = scmp.eq.s32.totalorder %s1341_s28, 0  ;;  %s105_s9 = sadd.s32 1, %s1329_s25 }
   0x6   : > { %s1578_s30 = smov (%p28_p0, %s27_s30), 0  ;;  %p1071_p5 = scmp.ge.s32.totalorder %s1341_s28, 4 }
   0x7   : > { %p114_p3 = por %p113_p2, %p112_p1  ;;  %s102_s8 = ssub.s32 %s1337_s27, %s1578_s30 }
   0x8   : > { %p103_p4 = scmp.eq.s32.totalorder %s102_s8, 0  ;;  %255 = sbr.rel (%p1071_p5) target bundleno = 23 (0x17), region = 32 }
   0xa   : > { %s1423_s10 = scalar_select %p103_p4, %s1329_s25, %s105_s9  }
   0xf   : > { %258 = sbr.rel (!%p114_p3) target bundleno = 23 (0x17), region = 36  ;;  %s260_s11 = sand.u32 (%p114_p3), 1, %s1329_s25  }
  0x10   : > { %s1130_s12 = sshll.u32 (%p114_p3), %s1337_s27, 4  ;;  %s1072_s13 = sshll.u32 (%p114_p3), %s260_s11, 6 }
  0x11   : > { %s265_s16 = scalar_lea.vmem (%p114_p3), %s1567_s3, %s1130_s12  ;;  %s262_s17 = scalar_lea.vmem (%p114_p3), [#allocation3], %s1072_s13 }
  0x12   : > { %v278_v0 = vld [vmem:[%s265_s16] sm:$0xff] (%p114_p3)  ;;  %v280_v1 = vld [vmem:[%s265_s16 + $0x8] sm:$0xff] (%p114_p3) }
  0x13   : > { %v282_v2 = vld [vmem:[%s265_s16 + $0x40] sm:$0xff] (%p114_p3)  ;;  %279 = vst [vmem:[%s262_s17] sm:$0xff] (%p114_p3), %v278_v0  ;;  %281 = vst [vmem:[%s262_s17 + $0x8] sm:$0xff] (%p114_p3), %v280_v1  ;;  %v284_v3 = vld [vmem:[%s265_s16 + $0x48] sm:$0xff] (%p114_p3) }
  0x14   : > { %283 = vst [vmem:[%s262_s17 + $0x10] sm:$0xff] (%p114_p3), %v282_v2  ;;  %v286_v4 = vld [vmem:[%s265_s16 + $0x80] sm:$0xff] (%p114_p3)  ;;  %v288_v5 = vld [vmem:[%s265_s16 + $0x88] sm:$0xff] (%p114_p3)  ;;  %285 = vst [vmem:[%s262_s17 + $0x18] sm:$0xff] (%p114_p3), %v284_v3 }
  0x15   : > { %287 = vst [vmem:[%s262_s17 + $0x20] sm:$0xff] (%p114_p3), %v286_v4  ;;  %289 = vst [vmem:[%s262_s17 + $0x28] sm:$0xff] (%p114_p3), %v288_v5  ;;  %v290_v6 = vld [vmem:[%s265_s16 + $0xc0] sm:$0xff] (%p114_p3)  ;;  %v292_v7 = vld [vmem:[%s265_s16 + $0xc8] sm:$0xff] (%p114_p3) }
  0x16   : > { %291 = vst [vmem:[%s262_s17 + $0x30] sm:$0xff] %v290_v6  ;;  %293 = vst [vmem:[%s262_s17 + $0x38] sm:$0xff] %v292_v7 }
  0x17 PF: > { %p1075_p6 = scmp.ge.s32.totalorder %s1341_s28, 1  ;;  %p315_p7 = scmp.lt.s32.totalorder %s1341_s28, 5 }
  0x19   : > { %p316_p8 = pnand %p1075_p6, %p315_p7 }
  0x1a   : > { %s322_s18 = sand.u32 (!%p316_p8), 1, %s1325_s24   ;;  %s1077_s19 = sshll.u32 (!%p316_p8), %s1333_s26, 2 }
  0x1b   : > { %319 = sbr.rel (%p316_p8) target bundleno = 825 (0x339), region = 67  ;;  %s1076_s20 = sshll.u32 (!%p316_p8), %s322_s18, 6 }
  0x1c   : > { %p370_p9 = scmp.lt.s32.totalorder (!%p316_p8), %s1077_s19, 15  ;;  %s1078_s21 = sshll.u32 (!%p316_p8), %s1333_s26, 6 }
  0x1d   : > { %p375_p10 = scmp.lt.s32.totalorder (!%p316_p8), %s1078_s21, 255  ;;  %s1447_s24 = scalar_lea.vmem (!%p316_p8), [#allocation3], %s1076_s20 }
  0x1e   : > { %p1080_p11 = scmp.ne.s32.totalorder (!%p316_p8), %s1333_s26, 0 }
  0x22   : > { %s1580_s19 = smov (!%p370_p9, %s1077_s19), 15  ;;  %s1582_s21 = smov (!%p375_p10, %s1078_s21), 255 }
  0x23   : > { %s372_s8 = scalar_lea.vmem %s1568_s4, %s1580_s19  ;;  %s1079_s9 = sshll.u32 %s1582_s21, 2  ;;  %v386_v8 = vld [vmem:[%s1564_s0] sm:$0xff] (!%p1080_p11)  ;;  %vm388_vm0 = vcmask (!%p1080_p11), 261120   ;;  %v387_v10 = vld [vmem:[%s1564_s0 + $0x8] sm:$0xff] (!%p1080_p11) }
  0x24   : > { %s1445_s13 = scalar_lea.vmem %s1569_s5, %s1079_s9  ;;  %385 = sbr.rel (%p1080_p11) target bundleno = 356 (0x164), region = 75  ;;  %v1083_v9 = vld [vmem:[%s1570_s6] ss:$0 sm:$0xff] (!%p1080_p11)  ;;  %v389_v11 = vsel (!%p1080_p11), %vm388_vm0, %v386_v8, 0.0  ;;  %v392_v14 = vsel (!%p1080_p11), %vm388_vm0, %v387_v10, 0.0 }
  0x25   : > { %v443_v12 = vadd.f32 (!%p1080_p11), %v1083_v9, %v386_v8  ;;  %v444_v13 = vadd.f32 (!%p1080_p11), %v1083_v9, %v387_v10  ;;  %390 = vadd.xlane.f32.xlu0 (!%p1080_p11), %v389_v11  ;;  %v1081_v33 = vld [vmem:[%s1565_s1] ss:$0 sm:$0xff] (!%p1080_p11) }
  0x26   : > { %v1082_v37 = vld [vmem:[%s1566_s2] ss:$0 sm:$0xff] (!%p1080_p11) }
  0x27   : > { %445 = vst.msk [vmem:[#allocation4] sm:$0xff] (!%p1080_p11), %vm388_vm0, %v443_v12  ;;  %446 = vst.msk [vmem:[#allocation4 + $0x8] sm:$0xff] (!%p1080_p11), %vm388_vm0, %v444_v13 }
  0x29   : > { %393 = vadd.xlane.f32.xlu0 (!%p1080_p11), %v392_v14 }
  0xb2   : > { %v391_v15 = vpop.xlane.xlu0 %390 }
  0xb3   : > { %v396_v16 = vmul.f32 0.03125, %v391_v15 }
  0xb5   : > { %v398_v17 = vsub.f32 %v386_v8, %v396_v16 }
  0xb6   : > { %v394_v18 = vpop.xlane.xlu0 %393 }
  0xb7   : > { %v397_v19 = vmul.f32 0.03125, %v394_v18  ;;  %v400_v20 = vmul.f32 %v398_v17, %v398_v17 }
  0xb9   : > { %v399_v21 = vsub.f32 %v387_v10, %v397_v19  ;;  %v402_v22 = vsel %vm388_vm0, %v400_v20, 0.0 }
  0xba   : > { %403 = vadd.xlane.f32.xlu1 %v402_v22 }
  0xbb   : > { %v401_v23 = vmul.f32 %v399_v21, %v399_v21 }
  0xbd   : > { %v405_v24 = vsel %vm388_vm0, %v401_v23, 0.0 }
  0xbe   : > { %406 = vadd.xlane.f32.xlu1 %v405_v24 }
 0x147   : > { %v404_v25 = vpop.xlane.xlu1 %403 }
 0x148   : > { %v408_v26 = vmul.f32 0.03125, %v404_v25 }
 0x14a   : > { %v410_v27 = vadd.f32 1e-05, %v408_v26 }
 0x14b   : > { %v407_v28 = vpop.xlane.xlu1 %406 }
 0x14c   : > { %1225 = vrsqrt.f32 %v410_v27  ;;  %v409_v29 = vmul.f32 0.03125, %v407_v28 }
 0x14e   : > { %v411_v30 = vadd.f32 1e-05, %v409_v29 }
 0x150   : > { %1227 = vrsqrt.f32 %v411_v30 }
 0x156   : > { %v1226_v31 = vpop.eup %1225 }
 0x157   : > { %v414_v32 = vmul.f32 %v1226_v31, %v398_v17 }
 0x159   : > { %v423_v35 = vmul.f32 %v1081_v33, %v414_v32 }
 0x15a   : > { %v1228_v34 = vpop.eup %1227 }
 0x15b   : > { %v415_v36 = vmul.f32 %v1228_v34, %v399_v21  ;;  %v432_v39 = vadd.f32 %v1082_v37, %v423_v35 }
 0x15d   : > { %v424_v38 = vmul.f32 %v1081_v33, %v415_v36 }
 0x15f   : > { %v433_v40 = vadd.f32 %v1082_v37, %v424_v38 }
 0x161   : > { %v434_v41 = vpack.c.bf16 %v433_v40, %v432_v39 }
 0x163   : > { %435 = vst.msk [vmem:[#allocation2] sm:$0xff] %vm388_vm0, %v434_v41 }
 0x164 PF: > { %v1229_v42 = vld [vmem:[%s1447_s24 + $0x4] ss:$16 sps:$4 sm:$0xff]   ;;  %v1231_v43 = vld [vmem:[%s1447_s24 + $0xc] ss:$16 sps:$4 sm:$0xff]   ;;  %v1343_v44 = vmov 0   ;;  %vm518_vm1 = vcmask 261120   ;;  %v458_v20 = vlaneseq }
 0x165   : > { %554 = vmatprep.mubr.bf16.mxu0 %v1343_v44  ;;  %597 = vmatprep.mubr.bf16.mxu1 %v1343_v44  ;;  %v1233_v45 = vld [vmem:[%s1447_s24] ss:$16 sps:$4 sm:$0xff]   ;;  %v1234_v46 = vld [vmem:[%s1447_s24 + $0x8] ss:$16 sps:$4 sm:$0xff]   ;;  %v1235_v47 = vld [vmem:[%s1447_s24 + $0x24] ss:$16 sps:$4 sm:$0xff]  }
 0x166   : > { %522 = vmatprep.subr.bf16.mxu0 %v1229_v42  ;;  %565 = vmatprep.subr.bf16.mxu1 %v1231_v43  ;;  %v1237_v48 = vld [vmem:[%s1447_s24 + $0x2c] ss:$16 sps:$4 sm:$0xff]   ;;  %v1239_v49 = vld [vmem:[%s1447_s24 + $0x20] ss:$16 sps:$4 sm:$0xff]   ;;  %v1240_v50 = vld [vmem:[%s1447_s24 + $0x28] ss:$16 sps:$4 sm:$0xff]  }
 0x167   : > { %523 = vmatpush1.bf16.msra.mxu0 %v1233_v45  ;;  %566 = vmatpush1.bf16.msra.mxu1 %v1234_v46  ;;  %v1241_v52 = vld [vmem:[%s1445_s13 + $0x40] sm:$0xff]   ;;  %v1245_v56 = vld [vmem:[%s1445_s13 + $0x48] sm:$0xff]   ;;  %v1249_v60 = vld [vmem:[%s1445_s13 + $0x50] sm:$0xff]   ;;  %v459_v21 = vshrl.u32 %v458_v20, 7  ;;  %s1344_s19 = smov [#allocation4]   ;;  %p1521_p12 = scmp.eq.s32.totalorder %s1068_s29, 3 }
 0x168   : > { %524 = vmatprep.subr.bf16.mxu0 %v1235_v47  ;;  %567 = vmatprep.subr.bf16.mxu1 %v1237_v48  ;;  %v1242_v53 = vld [vmem:[%s1445_s13 + $0xc0] sm:$0xff]   ;;  %v1246_v57 = vld [vmem:[%s1445_s13 + $0xc8] sm:$0xff]   ;;  %v1250_v61 = vld [vmem:[%s1445_s13 + $0xd0] sm:$0xff]  }
 0x169   : > { %v1243_v54 = vld [vmem:[%s1445_s13] sm:$0xff]   ;;  %v1247_v58 = vld [vmem:[%s1445_s13 + $0x8] sm:$0xff]   ;;  %v1251_v62 = vld [vmem:[%s1445_s13 + $0x10] sm:$0xff]   ;;  %v460_v22 = vsub.s32 0, %v459_v21  ;;  %v468_v23 = vsub.s32 2, %v459_v21  ;;  %v464_v25 = vsub.s32 1, %v459_v21 }
 0x16a   : > { %v447_v51 = vld [vmem:[#allocation2] sm:$0xff]  ;;  %v1248_v59 = vld [vmem:[%s1445_s13 + $0x88] sm:$0xff]   ;;  %v1252_v63 = vld [vmem:[%s1445_s13 + $0x90] sm:$0xff]   ;;  %v472_v26 = vsub.s32 3, %v459_v21 }
 0x16b   : > { %525 = vmatpush1.bf16.msra.mxu0 %v1239_v49  ;;  %568 = vmatpush1.bf16.msra.mxu1 %v1240_v50  ;;  %v1244_v55 = vld [vmem:[%s1445_s13 + $0x80] sm:$0xff]   ;;  %v1253_v0 = vld [vmem:[%s1445_s13 + $0x58] sm:$0xff]   ;;  %v1261_v8 = vld [vmem:[%s1445_s13 + $0x68] sm:$0xff]  }
 0x16c   : > { %1131 = vmatprep.subr.bf16.mxu0 %v1241_v52  ;;  %1153 = vmatprep.subr.bf16.mxu1 %v1242_v53  ;;  %v1254_v1 = vld [vmem:[%s1445_s13 + $0xd8] sm:$0xff]   ;;  %v1257_v4 = vld [vmem:[%s1445_s13 + $0x60] sm:$0xff]   ;;  %v1262_v9 = vld [vmem:[%s1445_s13 + $0xe8] sm:$0xff]  }
 0x16d   : > { %v1255_v2 = vld [vmem:[%s1445_s13 + $0x18] sm:$0xff]   ;;  %v1258_v5 = vld [vmem:[%s1445_s13 + $0xe0] sm:$0xff]   ;;  %v1263_v10 = vld [vmem:[%s1445_s13 + $0x28] sm:$0xff]  }
 0x16e   : > { %1092 = vmatmul.mubr.msk.bf16.vlgmr.msra.gmra.mrb[0].mxu0 %vm518_vm1, %v447_v51  ;;  %1093 = vmatmul.mubr.msk.bf16.vlgmr.msra.gmra.mrb[0].mxu1 %vm518_vm1, %v447_v51  ;;  %v1256_v3 = vld [vmem:[%s1445_s13 + $0x98] sm:$0xff]   ;;  %v1259_v6 = vld [vmem:[%s1445_s13 + $0x20] sm:$0xff]   ;;  %v1264_v11 = vld [vmem:[%s1445_s13 + $0xa8] sm:$0xff]  }
 0x16f   : > { %1132 = vmatpush3.bf16.msra.mxu0 %v1243_v54  ;;  %1154 = vmatpush3.bf16.msra.mxu1 %v1244_v55  ;;  %v1260_v7 = vld [vmem:[%s1445_s13 + $0xa0] sm:$0xff]   ;;  %v1265_v12 = vld [vmem:[%s1445_s13 + $0x70] sm:$0xff]   ;;  %v1269_v16 = vld [vmem:[%s1445_s13 + $0x78] sm:$0xff]  }
 0x170   : > { %1133 = vmatprep.subr.bf16.mxu0 %v1245_v56  ;;  %1155 = vmatprep.subr.bf16.mxu1 %v1246_v57  ;;  %v1266_v13 = vld [vmem:[%s1445_s13 + $0xf0] sm:$0xff]   ;;  %v1270_v17 = vld [vmem:[%s1445_s13 + $0xf8] sm:$0xff]   ;;  %v456_v24 = vld [vmem:[%s372_s8] sm:$0xf]  ;;  %s973_s8 = sshll.u32 %s1344_s19, 4  ;;  %s974_s8 = int_to_ptr.vmem [resolvable:$true] %s973_s8 }
 0x171   : > { %v1267_v14 = vld [vmem:[%s1445_s13 + $0x30] sm:$0xff]   ;;  %v1271_v18 = vld [vmem:[%s1445_s13 + $0x38] sm:$0xff]   ;;  %v461_v27 = vrot.slane %v456_v24, %v460_v22  ;;  %v469_v28 = vrot.slane %v456_v24, %v468_v23  ;;  %v465_v29 = vrot.slane %v456_v24, %v464_v25  ;;  %v473_v30 = vrot.slane %v456_v24, %v472_v26  ;;  %p1280_p2 = scmp.lt.s32.totalorder %s974_s8, %s974_s8 }
 0x172   : > { %v1268_v15 = vld [vmem:[%s1445_s13 + $0xb0] sm:$0xff]   ;;  %v1272_v19 = vld [vmem:[%s1445_s13 + $0xb8] sm:$0xff]   ;;  %s1273_s13 = scalar_lea.vmem %s974_s8, 256 }
 0x173   : > { %1134 = vmatpush3.bf16.msra.mxu0 %v1247_v58  ;;  %1156 = vmatpush3.bf16.msra.mxu1 %v1248_v59  ;;  %p1274_p13 = scmp.ne.s32.totalorder %s974_s8, %s1273_s13  ;;  %p1281_p3 = scmp.lt.s32.totalorder %s1273_s13, %s1273_s13 }
 0x174   : > { %1135 = vmatprep.subr.bf16.mxu0 %v1249_v60  ;;  %1157 = vmatprep.subr.bf16.mxu1 %v1250_v61 }
 0x175   : > { %p1275_p0 = pnand %p1274_p13, %p1521_p12  ;;  %p1282_p4 = por %p1281_p3, %p1280_p2 }
 0x177   : > { %1136 = vmatpush3.bf16.msra.mxu0 %v1251_v62  ;;  %1158 = vmatpush3.bf16.msra.mxu1 %v1252_v63  ;;  %p1276_p1 = pneg %p1275_p0 }
 0x178   : > { %1137 = vmatprep.subr.bf16.mxu0 %v1253_v0  ;;  %1159 = vmatprep.subr.bf16.mxu1 %v1254_v1 }
 0x179   : > { %p1283_p5 = pnand %p1282_p4, %p1276_p1 }
 0x17b   : > { %1138 = vmatpush3.bf16.msra.mxu0 %v1255_v2  ;;  %1160 = vmatpush3.bf16.msra.mxu1 %v1256_v3  ;;  %v616_v3 = vld [vmem:[#allocation4] sm:$0xff] }
 0x17c   : > { %1139 = vmatprep.subr.bf16.mxu0 %v1257_v4  ;;  %1161 = vmatprep.subr.bf16.mxu1 %v1258_v5 }
 0x17f   : > { %1140 = vmatpush3.bf16.msra.mxu0 %v1259_v6  ;;  %1162 = vmatpush3.bf16.msra.mxu1 %v1260_v7 }
 0x180   : > { %1141 = vmatprep.subr.bf16.mxu0 %v1261_v8  ;;  %1163 = vmatprep.subr.bf16.mxu1 %v1262_v9  ;;  %v617_v9 = vld [vmem:[#allocation4 + $0x8] sm:$0xff] }
 0x183   : > { %1142 = vmatpush3.bf16.msra.mxu0 %v1263_v10  ;;  %1164 = vmatpush3.bf16.msra.mxu1 %v1264_v11 }
 0x184   : > { %1143 = vmatprep.subr.bf16.mxu0 %v1265_v12  ;;  %1165 = vmatprep.subr.bf16.mxu1 %v1266_v13 }
 0x187   : > { %1144 = vmatpush3.bf16.msra.mxu0 %v1267_v14  ;;  %1166 = vmatpush3.bf16.msra.mxu1 %v1268_v15 }
 0x188   : > { %1145 = vmatprep.subr.bf16.mxu0 %v1269_v16  ;;  %1167 = vmatprep.subr.bf16.mxu1 %v1270_v17 }
 0x18b   : > { %1146 = vmatpush3.bf16.msra.mxu0 %v1271_v18  ;;  %1168 = vmatpush3.bf16.msra.mxu1 %v1272_v19 }
 0x241   : > { %v556_v31 = vpop.f32.mrb[0].mxu0  ;;  %v599_v32 = vpop.f32.mrb[0].mxu1 }
 0x242   : > { %v557_v33 = vadd.f32 %v556_v31, %v461_v27  ;;  %v600_v34 = vadd.f32 %v599_v32, %v469_v28  ;;  %v558_v35 = vpop.f32.mrb[1].mxu0  ;;  %v601_v36 = vpop.f32.mrb[1].mxu1 }
 0x243   : > { %v559_v37 = vadd.f32 %v558_v35, %v465_v29  ;;  %v602_v38 = vadd.f32 %v601_v36, %v473_v30  ;;  %v560_v39 = vpop.f32.mrb[2].mxu0  ;;  %v603_v40 = vpop.f32.mrb[2].mxu1 }
 0x244   : > { %v561_v41 = vadd.f32 %v560_v39, %v461_v27  ;;  %v604_v42 = vadd.f32 %v603_v40, %v469_v28  ;;  %v562_v43 = vpop.f32.mrb[3].mxu0  ;;  %v605_v44 = vpop.f32.mrb[3].mxu1  ;;  %v608_v47 = vmax.f32 %v557_v33, 0.0  ;;  %v610_v48 = vmax.f32 %v600_v34, 0.0 }
 0x245   : > { %v563_v45 = vadd.f32 %v562_v43, %v465_v29  ;;  %v606_v46 = vadd.f32 %v605_v44, %v473_v30  ;;  %v609_v51 = vmax.f32 %v559_v37, 0.0  ;;  %v611_v52 = vmax.f32 %v602_v38, 0.0 }
 0x246   : > { %v612_v49 = vmax.f32 %v561_v41, 0.0  ;;  %v614_v50 = vmax.f32 %v604_v42, 0.0 }
 0x247   : > { %v613_v53 = vmax.f32 %v563_v45, 0.0  ;;  %v615_v54 = vmax.f32 %v606_v46, 0.0 }
 0x248   : > { %v618_v55 = vpack.c.bf16 %v612_v49, %v608_v47  ;;  %v620_v56 = vpack.c.bf16 %v614_v50, %v610_v48 }
 0x249   : > { %v619_v57 = vpack.c.bf16 %v613_v53, %v609_v51  ;;  %v621_v58 = vpack.c.bf16 %v615_v54, %v611_v52 }
 0x24b   : > { %910 = vmatprep.mubr.bf16.mxu0 %v619_v57  ;;  %951 = vmatprep.mubr.bf16.mxu1 %v621_v58 }
 0x24c   : > { %911 = vmatmul.mubr.bf16.vlgmr.msra.gmra.mrb[4].mxu0 %v618_v55  ;;  %952 = vmatmul.mubr.bf16.vlgmr.msra.gmra.mrb[4].mxu1 %v620_v56 }
 0x31f   : > { %v1147_v59 = vpop.f32.mrb[4].mxu0  ;;  %v1169_v60 = vpop.f32.mrb[4].mxu1 }
 0x320   : > { %v1148_v61 = vpop.f32.mrb[5].mxu0  ;;  %v1170_v62 = vpop.f32.mrb[5].mxu1 }
 0x321   : > { %v1149_v63 = vadd.f32 %v1148_v61, %v1147_v59  ;;  %v1171_v0 = vadd.f32 %v1170_v62, %v1169_v60  ;;  %v1150_v1 = vpop.f32.mrb[6].mxu0  ;;  %v1172_v2 = vpop.f32.mrb[6].mxu1 }
 0x322   : > { %v1151_v4 = vpop.f32.mrb[7].mxu0  ;;  %v1173_v5 = vpop.f32.mrb[7].mxu1 }
 0x323   : > { %v954_v6 = vadd.f32 %v1171_v0, %v1149_v63  ;;  %v1152_v7 = vadd.f32 %v1151_v4, %v1150_v1  ;;  %v1174_v8 = vadd.f32 %v1173_v5, %v1172_v2 }
 0x325   : > { %v960_v10 = vadd.f32 %v954_v6, %v616_v3  ;;  %v957_v11 = vadd.f32 %v1174_v8, %v1152_v7 }
 0x327   : > { %962 = vst.msk [vmem:[#allocation4] sm:$0xff] %vm518_vm1, %v960_v10  ;;  %v961_v12 = vadd.f32 %v957_v11, %v617_v9 }
 0x329   : > { %963 = vst.msk [vmem:[#allocation4 + $0x8] sm:$0xff] %vm518_vm1, %v961_v12 }
 0x32a   : > { %1286 = shalt.err (!%p1283_p5)
}
 0x32b   : > { %s1287_s14 = scalar_lea.hbm %s1571_s7, 256 }
 0x32c   : > { %p1288_p6 = scmp.ne.s32.totalorder %s1571_s7, %s1287_s14  ;;  %p1293_p9 = scmp.lt.u32.totalorder %s1287_s14, %s1571_s7 }
 0x32e   : > { %p1289_p7 = pnand %p1288_p6, %p1521_p12 }
 0x330   : > { %p1290_p8 = pneg %p1289_p7 }
 0x332   : > { %p1295_p10 = pnand %p1293_p9, %p1290_p8 }
 0x334   : > { %1298 = shalt.err (!%p1295_p10)
}
 0x335   : > { %s1345_s21 = smov 128   ;;  %s1346_s26 = smov 8  }
 0x336   : > { %1176 = dma.vmem_to_hbm [thread:$0]  (%p1521_p12), %s974_s8, 256, %s1571_s7, [#allocation5], %s1345_s21, %s1345_s21, %s1346_s26  }
 0x337   : > { %1320 = dma.done.wait (%p1521_p12), [#allocation5], 256  }
 0x338   : > { %1322 = vsyncadd (%p1521_p12), [#allocation5], 4294967040 }
 0x339 PF: > { %s18_s28 = sadd.s32 1, %s1341_s28   ;;  %s1573_s24 = smov %s1329_s25 }
 0x33a   : > { %p15_p11 = scmp.ge.s32.totalorder %s18_s28, 6   ;;  %s1574_s25 = smov %s1423_s10 }
 0x33b   : > { %s1575_s26 = smov %s1337_s27  ;;  %s1576_s27 = smov %s1578_s30 }
 0x33c   :  { %17 = sbr.rel (!%p15_p11) target bundleno = 3 (0x3), region = 117 }
 0x343   :  { %989 = vsyncpa [#allocation5], 1 }
 0x344   :  { %991 = vsyncpa [#allocation5 + $0x1], 1 }

</bundles_post_ra>
